<compile_context>
chip_gen: v5e
topology: v5e:2x2
jax: 0.10.0
libtpu: 0.0.40
codegen_flags: <defaults>
</compile_context>

<pallas_src>
import functools
import math

import jax
import jax.numpy as jnp
import numpy as np
from jax.experimental import pallas as pl
from jax.experimental.pallas import tpu as pltpu

# Full-size module dims (spec).  Not instantiated in the demo (host-memory budget).
IN_FEATURES = 24000   # encoder input / decoder output
HIDDEN = 20000        # encoder output / decoder input


def _round_up(a, m):
    return (a + m - 1) // m * m


def _vmem_capacity_bytes():
    """Physical VMEM per TensorCore (128 MiB v5e/v6e, 64 MiB v7x)."""
    try:
        info = pltpu.get_tpu_info()
        for name in ("vmem_capacity_bytes", "vmem_size_bytes", "vmem_bytes"):
            cap = getattr(info, name, None)
            if cap:
                return int(cap)
    except Exception:
        pass
    return 64 << 20  # conservative fallback (v7x per-TC size)


def default_tiles():
    """Chip-gated full-size tiles for the streamed bf16 weight slab."""
    cap = _vmem_capacity_bytes()
    if cap >= (96 << 20):
        # v5e / v6e (128 MiB VMEM): 32 MiB bf16 slab, 64 MiB double-buffered.
        return 4096, 4096
    # v7x (64 MiB VMEM): 8 MiB slab (16 MiB double-buffered); tn=2048 gives an
    # even N-tile count for both layers (20480/2048=10, 24576/2048=12).
    return 2048, 2048


def _vmem_limit(m, kp, tk, tn, use_scratch):
    """VMEM request: estimated need, floored at 32 MiB, capped at ~85% of physical."""
    cap = int(_vmem_capacity_bytes() * 0.85)
    est = (
        2 * tk * tn * 2                     # bf16 weight slab, double-buffered
        + 2 * m * kp * 2                    # resident bf16 activation (conservatively x2)
        + 2 * tn * 4                        # f32 bias tile, double-buffered
        + 2 * m * tn * 4                    # output tile, double-buffered (assume f32)
        + (m * tn * 4 if use_scratch else 0)  # f32 accumulator scratch (bf16-out layer)
    )
    est = int(est * 1.25) + (4 << 20)       # headroom for internal scratch
    return min(cap, max(32 << 20, est))


def _linear_kernel(x_ref, w_ref, b_ref, o_ref, *scratch, tk, apply_tanh):
    """One (j, k) grid step of y = x @ W + b (+ optional tanh).

    grid = (N_tiles, K_tiles); K is the innermost reduction axis ("arbitrary").
    If the output dtype is f32 we accumulate directly into o_ref (its block
    index is constant across k, so it stays VMEM-resident); otherwise the f32
    accumulation lives in a small VMEM scratch and is cast at the last k step.
    x (bf16) is fully VMEM-resident; the bf16 weight slab and the f32 bias tile
    are streamed per step.
    """
    acc_ref = scratch[0] if scratch else o_ref
    k = pl.program_id(1)

    @pl.when(k == 0)
    def _init():
        # Fold the bias into the accumulator init (no epilogue bias add).
        acc_ref[...] = jnp.broadcast_to(b_ref[...], acc_ref.shape)

    koff = pl.multiple_of(k * tk, tk)
    x_tile = x_ref[:, pl.ds(koff, tk)]            # (m, tk) bf16, no cast needed
    acc_ref[...] += jnp.dot(x_tile, w_ref[...],   # (tk, tn) bf16 slab
                            preferred_element_type=jnp.float32)

    if apply_tanh or scratch:
        @pl.when(k == pl.num_programs(1) - 1)
        def _finish():
            y = acc_ref[...]
            if apply_tanh:
                y = jnp.tanh(y)
            o_ref[...] = y.astype(o_ref.dtype)


def linear_pallas(x, w_blocked, b, *, tk, tn, apply_tanh, out_dtype):
    """x: (M, Kp) bf16, w_blocked: (Np/tn, Kp/tk, tk, tn) bf16, b: (1, Np) f32.

    Returns (M, Np) array of dtype `out_dtype`.
    """
    m, kp = x.shape
    nt, kt, tk_, tn_ = w_blocked.shape
    assert tk_ == tk and tn_ == tn and kt * tk == kp
    np_ = nt * tn
    assert b.shape == (1, np_)

    # Accumulate directly into the f32 output; keep a f32 scratch only when the
    # output is narrower (bf16 layer-1 output) so accumulation stays f32.
    use_scratch = (jnp.dtype(out_dtype) != jnp.dtype(jnp.float32))
    scratch_shapes = [pltpu.VMEM((m, tn), jnp.float32)] if use_scratch else []

    kernel = functools.partial(_linear_kernel, tk=tk, apply_tanh=apply_tanh)

    return pl.pallas_call(
        kernel,
        out_shape=jax.ShapeDtypeStruct((m, np_), out_dtype),
        grid_spec=pltpu.PrefetchScalarGridSpec(
            num_scalar_prefetch=0,
            grid=(nt, kt),
            in_specs=[
                # Fully VMEM-resident bf16 activation.
                pl.BlockSpec((m, kp), lambda j, k: (0, 0)),
                # Pre-blocked bf16 weight: one contiguous (tk, tn) slab per step.
                pl.BlockSpec((pl.Squeezed(), pl.Squeezed(), tk, tn),
                             lambda j, k: (j, k, 0, 0)),
                # Tiled f32 bias.
                pl.BlockSpec((1, tn), lambda j, k: (0, j)),
            ],
            out_specs=pl.BlockSpec((m, tn), lambda j, k: (0, j)),
            scratch_shapes=scratch_shapes,
        ),
        compiler_params=pltpu.CompilerParams(
            dimension_semantics=("parallel", "arbitrary"),
            vmem_limit_bytes=_vmem_limit(m, kp, tk, tn, use_scratch),
        ),
    )(x, w_blocked, b)


def make_forward(in_features, hidden, *, tk=None, tn=None):
    """Builds the jitted forward pass.  Both feature dims are padded to multiples
    of tn (with tn % tk == 0), so each padded dim is tile-aligned both as K and
    as N (each dim plays both roles across the two layers)."""
    if tk is None or tn is None:
        tk, tn = default_tiles()
    assert tn % tk == 0
    kp_in = _round_up(in_features, tn)   # padded encoder-K / decoder-N
    np_hid = _round_up(hidden, tn)       # padded encoder-N / decoder-K

    @jax.jit
    def forward(x, w1b, b1p, w2b, b2p):
        # x: (batch, in_features) f32 -> pad + single cast to bf16.
        xp = jnp.pad(x, ((0, 0), (0, kp_in - x.shape[1]))).astype(jnp.bfloat16)
        # Encoder: bf16 output so the decoder streams a bf16 activation directly.
        h = linear_pallas(xp, w1b, b1p, tk=tk, tn=tn,
                          apply_tanh=False, out_dtype=jnp.bfloat16)
        # Decoder + Tanh: f32 output, accumulated in-place in o_ref.
        y = linear_pallas(h, w2b, b2p, tk=tk, tn=tn,
                          apply_tanh=True, out_dtype=jnp.float32)
        return y[:, :in_features]

    return forward, kp_in, np_hid, tk, tn


def _block_weight(w, kp, np_, tk, tn):
    """Zero-pad (K, N) weight to (kp, np_), cast to bf16, and pre-block in HBM to
    (np_/tn, kp/tk, tk, tn) so each grid step DMAs one contiguous slab."""
    wp = jnp.pad(w, ((0, kp - w.shape[0]), (0, np_ - w.shape[1]))).astype(jnp.bfloat16)
    return wp.reshape(kp // tk, tk, np_ // tn, tn).transpose(2, 0, 1, 3)


def _unblock_weight(wb):
    """Inverse of _block_weight (used only for the reference check)."""
    nt, kt, tk, tn = wb.shape
    return wb.transpose(1, 2, 0, 3).reshape(kt * tk, nt * tn)


def init_params(key, in_features, hidden, kp_in, np_hid, *, tk, tn):
    """Deterministic nn.Linear-style init (U[-1/sqrt(fan_in), 1/sqrt(fan_in)]).
    Weights are stored as (in, out) = transpose of torch's (out, in), cast to
    bf16 and pre-blocked; biases stay f32 (zero-padded)."""
    k1, k2, k3, k4 = jax.random.split(key, 4)
    bound1 = 1.0 / math.sqrt(in_features)
    bound2 = 1.0 / math.sqrt(hidden)

    w1 = jax.random.uniform(k1, (in_features, hidden), jnp.float32, -bound1, bound1)
    w1b = _block_weight(w1, kp_in, np_hid, tk, tn)
    del w1
    b1p = jnp.pad(jax.random.uniform(k2, (1, hidden), jnp.float32, -bound1, bound1),
                  ((0, 0), (0, np_hid - hidden)))

    w2 = jax.random.uniform(k3, (hidden, in_features), jnp.float32, -bound2, bound2)
    w2b = _block_weight(w2, np_hid, kp_in, tk, tn)
    del w2
    b2p = jnp.pad(jax.random.uniform(k4, (1, in_features), jnp.float32, -bound2, bound2),
                  ((0, 0), (0, kp_in - in_features)))
    return w1b, b1p, w2b, b2p


if __name__ == "__main__":
    # Scaled-down instance (full 24000/20000 weights are ~2 GB bf16 and stress the
    # sandbox host); the kernel / tiling / padding code path is identical to the
    # full-size configuration, just with smaller tiles so both grid axes still
    # have multiple steps.
    in_features, hidden, batch = 1000, 800, 2
    tk_demo, tn_demo = 256, 512

    forward, kp_in, np_hid, tk, tn = make_forward(in_features, hidden,
                                                  tk=tk_demo, tn=tn_demo)

    key = jax.random.PRNGKey(0)
    pkey, xkey = jax.random.split(key)
    w1b, b1p, w2b, b2p = init_params(pkey, in_features, hidden, kp_in, np_hid,
                                     tk=tk, tn=tn)
    x = jax.random.normal(xkey, (batch, in_features), jnp.float32)

    out = jax.block_until_ready(forward(x, w1b, b1p, w2b, b2p))
    assert out.shape == (batch, in_features) and out.dtype == jnp.float32

    # Pure-JAX reference at the kernel's precision (bf16 weights / bf16
    # activations, f32 accumulation, bf16 intermediate h) to validate end-to-end.
    w1 = _unblock_weight(w1b)[:in_features, :hidden].astype(jnp.float32)
    b1 = b1p[0, :hidden]
    w2 = _unblock_weight(w2b)[:hidden, :in_features].astype(jnp.float32)
    b2 = b2p[0, :in_features]
    xb = x.astype(jnp.bfloat16).astype(jnp.float32)
    h_ref = jnp.dot(xb, w1, precision=jax.lax.Precision.HIGHEST) + b1
    hb = h_ref.astype(jnp.bfloat16).astype(jnp.float32)
    y_ref = jnp.tanh(jnp.dot(hb, w2, precision=jax.lax.Precision.HIGHEST) + b2)
    np.testing.assert_allclose(np.asarray(out), np.asarray(y_ref),
                               rtol=1e-2, atol=1e-2)

    print("KERNEL_OK")
</pallas_src>

<mosaic_0001>
module attributes {stable_mosaic.version = 11 : i64} {
  func.func @_linear_kernel(%arg0: i32, %arg1: i32, %arg2: memref<2x1024xbf16, #tpu.memory_space<vmem>>, %arg3: memref<1x1x256x512xbf16, #tpu.memory_space<vmem>>, %arg4: memref<1x512xf32, #tpu.memory_space<vmem>>, %arg5: memref<2x512xf32, #tpu.memory_space<vmem>>) attributes {dimension_semantics = [#tpu.dimension_semantics<parallel>, #tpu.dimension_semantics<arbitrary>], iteration_bounds = array<i64: 2, 4>, scalar_prefetch = 0 : i64, scratch_operands = 0 : i64, tpu.core_type = #tpu.core_type<tc>, window_params = [{pipeline_mode = #tpu.pipeline_mode<synchronous>, transform_indices = @transform_0, window_bounds = array<i64: 2, 1024>}, {transform_indices = @transform_1, window_bounds = array<i64: 1, 1, 256, 512>}, {transform_indices = @transform_2, window_bounds = array<i64: 1, 512>}, {transform_indices = @transform_3, window_bounds = array<i64: 2, 512>}]} {
    %c0_i32 = arith.constant 0 : i32
    %0 = arith.cmpi eq, %arg1, %c0_i32 : i32
    %1 = arith.extui %0 : i1 to i32
    %c0_i32_0 = arith.constant 0 : i32
    %2 = arith.cmpi ne, %1, %c0_i32_0 : i32
    scf.if %2 {
      %c0_10 = arith.constant 0 : index
      %c0_11 = arith.constant 0 : index
      %16 = vector.load %arg4[%c0_10, %c0_11] : memref<1x512xf32, #tpu.memory_space<vmem>>, vector<1x512xf32>
      %17 = vector.shape_cast %16 : vector<1x512xf32> to vector<1x512xf32>
      %18 = vector.broadcast %17 : vector<1x512xf32> to vector<2x512xf32>
      %c0_12 = arith.constant 0 : index
      %c0_13 = arith.constant 0 : index
      %19 = vector.load %arg5[%c0_12, %c0_13] : memref<2x512xf32, #tpu.memory_space<vmem>>, vector<2x512xf32>
      tpu.vector_store %arg5[%c0_12, %c0_13], %18 {strides = array<i32>} : memref<2x512xf32, #tpu.memory_space<vmem>>, vector<2x512xf32>,
    } else {
    }
    %c256_i32 = arith.constant 256 : i32
    %3 = arith.muli %arg1, %c256_i32 : i32
    %4 = tpu.assume_multiple %3, 256 : i32
    %c0 = arith.constant 0 : index
    %5 = arith.index_cast %4 : i32 to index
    %6 = vector.load %arg2[%c0, %5] : memref<2x1024xbf16, #tpu.memory_space<vmem>>, vector<2x256xbf16>
    %c0_1 = arith.constant 0 : index
    %c0_2 = arith.constant 0 : index
    %7 = vector.load %arg5[%c0_1, %c0_2] : memref<2x512xf32, #tpu.memory_space<vmem>>, vector<2x512xf32>
    %c0_3 = arith.constant 0 : index
    %c0_4 = arith.constant 0 : index
    %c0_5 = arith.constant 0 : index
    %c0_6 = arith.constant 0 : index
    %8 = vector.load %arg3[%c0_3, %c0_4, %c0_5, %c0_6] : memref<1x1x256x512xbf16, #tpu.memory_space<vmem>>, vector<1x1x256x512xbf16>
    %9 = vector.shape_cast %8 : vector<1x1x256x512xbf16> to vector<256x512xbf16>
    %cst = arith.constant dense<0.000000e+00> : vector<2x512xf32>
    %10 = tpu.matmul %6, %9, %cst {dimension_numbers = #tpu.dot_dimension_numbers<[1], [0], [0], [1], [0, 0, 1, 1], [], []>} : vector<2x256xbf16>, vector<256x512xbf16>, vector<2x512xf32> -> vector<2x512xf32>
    %11 = arith.addf %7, %10 : vector<2x512xf32>
    %c0_7 = arith.constant 0 : index
    %c0_8 = arith.constant 0 : index
    %12 = vector.load %arg5[%c0_7, %c0_8] : memref<2x512xf32, #tpu.memory_space<vmem>>, vector<2x512xf32>
    tpu.vector_store %arg5[%c0_7, %c0_8], %11 {strides = array<i32>} : memref<2x512xf32, #tpu.memory_space<vmem>>, vector<2x512xf32>,
    %c3_i32 = arith.constant 3 : i32
    %13 = arith.cmpi eq, %arg1, %c3_i32 : i32
    %14 = arith.extui %13 : i1 to i32
    %c0_i32_9 = arith.constant 0 : i32
    %15 = arith.cmpi ne, %14, %c0_i32_9 : i32
    scf.if %15 {
      %c0_10 = arith.constant 0 : index
      %c0_11 = arith.constant 0 : index
      %16 = vector.load %arg5[%c0_10, %c0_11] : memref<2x512xf32, #tpu.memory_space<vmem>>, vector<2x512xf32>
      %17 = math.tanh %16 : vector<2x512xf32>
      %c0_12 = arith.constant 0 : index
      %c0_13 = arith.constant 0 : index
      %18 = vector.load %arg5[%c0_12, %c0_13] : memref<2x512xf32, #tpu.memory_space<vmem>>, vector<2x512xf32>
      tpu.vector_store %arg5[%c0_12, %c0_13], %17 {strides = array<i32>} : memref<2x512xf32, #tpu.memory_space<vmem>>, vector<2x512xf32>,
    } else {
    }
    return
  }
  func.func @transform_0(%arg0: i32, %arg1: i32) -> (i32, i32) {
    %c0_i32 = arith.constant 0 : i32
    %c0_i32_0 = arith.constant 0 : i32
    %c0_i32_1 = arith.constant 0 : i32
    return %c0_i32, %c0_i32_0 : i32, i32
  }
  func.func @transform_1(%arg0: i32, %arg1: i32) -> (i32, i32, i32, i32) {
    %c0_i32 = arith.constant 0 : i32
    %c0_i32_0 = arith.constant 0 : i32
    %c0_i32_1 = arith.constant 0 : i32
    return %arg0, %arg1, %c0_i32, %c0_i32_0 : i32, i32, i32, i32
  }
  func.func @transform_2(%arg0: i32, %arg1: i32) -> (i32, i32) {
    %c0_i32 = arith.constant 0 : i32
    %c0_i32_0 = arith.constant 0 : i32
    return %c0_i32, %arg0 : i32, i32
  }
  func.func @transform_3(%arg0: i32, %arg1: i32) -> (i32, i32) {
    %c0_i32 = arith.constant 0 : i32
    %c0_i32_0 = arith.constant 0 : i32
    return %c0_i32, %arg0 : i32, i32
  }
}

module attributes {stable_mosaic.version = 11 : i64} {
  func.func @_linear_kernel(%arg0: i32, %arg1: i32, %arg2: memref<2x1024xbf16, #tpu.memory_space<vmem>>, %arg3: memref<1x1x256x512xbf16, #tpu.memory_space<vmem>>, %arg4: memref<1x512xf32, #tpu.memory_space<vmem>>, %arg5: memref<2x512xbf16, #tpu.memory_space<vmem>>, %arg6: memref<2x512xf32, #tpu.memory_space<vmem>>) attributes {dimension_semantics = [#tpu.dimension_semantics<parallel>, #tpu.dimension_semantics<arbitrary>], iteration_bounds = array<i64: 2, 4>, scalar_prefetch = 0 : i64, scratch_operands = 1 : i64, tpu.core_type = #tpu.core_type<tc>, window_params = [{pipeline_mode = #tpu.pipeline_mode<synchronous>, transform_indices = @transform_0, window_bounds = array<i64: 2, 1024>}, {transform_indices = @transform_1, window_bounds = array<i64: 1, 1, 256, 512>}, {transform_indices = @transform_2, window_bounds = array<i64: 1, 512>}, {transform_indices = @transform_3, window_bounds = array<i64: 2, 512>}]} {
    %c0_i32 = arith.constant 0 : i32
    %0 = arith.cmpi eq, %arg1, %c0_i32 : i32
    %1 = arith.extui %0 : i1 to i32
    %c0_i32_0 = arith.constant 0 : i32
    %2 = arith.cmpi ne, %1, %c0_i32_0 : i32
    scf.if %2 {
      %c0_10 = arith.constant 0 : index
      %c0_11 = arith.constant 0 : index
      %16 = vector.load %arg4[%c0_10, %c0_11] : memref<1x512xf32, #tpu.memory_space<vmem>>, vector<1x512xf32>
      %17 = vector.shape_cast %16 : vector<1x512xf32> to vector<1x512xf32>
      %18 = vector.broadcast %17 : vector<1x512xf32> to vector<2x512xf32>
      %c0_12 = arith.constant 0 : index
      %c0_13 = arith.constant 0 : index
      %19 = vector.load %arg6[%c0_12, %c0_13] : memref<2x512xf32, #tpu.memory_space<vmem>>, vector<2x512xf32>
      tpu.vector_store %arg6[%c0_12, %c0_13], %18 {strides = array<i32>} : memref<2x512xf32, #tpu.memory_space<vmem>>, vector<2x512xf32>,
    } else {
    }
    %c256_i32 = arith.constant 256 : i32
    %3 = arith.muli %arg1, %c256_i32 : i32
    %4 = tpu.assume_multiple %3, 256 : i32
    %c0 = arith.constant 0 : index
    %5 = arith.index_cast %4 : i32 to index
    %6 = vector.load %arg2[%c0, %5] : memref<2x1024xbf16, #tpu.memory_space<vmem>>, vector<2x256xbf16>
    %c0_1 = arith.constant 0 : index
    %c0_2 = arith.constant 0 : index
    %7 = vector.load %arg6[%c0_1, %c0_2] : memref<2x512xf32, #tpu.memory_space<vmem>>, vector<2x512xf32>
    %c0_3 = arith.constant 0 : index
    %c0_4 = arith.constant 0 : index
    %c0_5 = arith.constant 0 : index
    %c0_6 = arith.constant 0 : index
    %8 = vector.load %arg3[%c0_3, %c0_4, %c0_5, %c0_6] : memref<1x1x256x512xbf16, #tpu.memory_space<vmem>>, vector<1x1x256x512xbf16>
    %9 = vector.shape_cast %8 : vector<1x1x256x512xbf16> to vector<256x512xbf16>
    %cst = arith.constant dense<0.000000e+00> : vector<2x512xf32>
    %10 = tpu.matmul %6, %9, %cst {dimension_numbers = #tpu.dot_dimension_numbers<[1], [0], [0], [1], [0, 0, 1, 1], [], []>} : vector<2x256xbf16>, vector<256x512xbf16>, vector<2x512xf32> -> vector<2x512xf32>
    %11 = arith.addf %7, %10 : vector<2x512xf32>
    %c0_7 = arith.constant 0 : index
    %c0_8 = arith.constant 0 : index
    %12 = vector.load %arg6[%c0_7, %c0_8] : memref<2x512xf32, #tpu.memory_space<vmem>>, vector<2x512xf32>
    tpu.vector_store %arg6[%c0_7, %c0_8], %11 {strides = array<i32>} : memref<2x512xf32, #tpu.memory_space<vmem>>, vector<2x512xf32>,
    %c3_i32 = arith.constant 3 : i32
    %13 = arith.cmpi eq, %arg1, %c3_i32 : i32
    %14 = arith.extui %13 : i1 to i32
    %c0_i32_9 = arith.constant 0 : i32
    %15 = arith.cmpi ne, %14, %c0_i32_9 : i32
    scf.if %15 {
      %c0_10 = arith.constant 0 : index
      %c0_11 = arith.constant 0 : index
      %16 = vector.load %arg6[%c0_10, %c0_11] : memref<2x512xf32, #tpu.memory_space<vmem>>, vector<2x512xf32>
      %17 = arith.truncf %16 : vector<2x512xf32> to vector<2x512xbf16>
      %c0_12 = arith.constant 0 : index
      %c0_13 = arith.constant 0 : index
      %18 = vector.load %arg5[%c0_12, %c0_13] : memref<2x512xbf16, #tpu.memory_space<vmem>>, vector<2x512xbf16>
      tpu.vector_store %arg5[%c0_12, %c0_13], %17 {strides = array<i32>} : memref<2x512xbf16, #tpu.memory_space<vmem>>, vector<2x512xbf16>,
    } else {
    }
    return
  }
  func.func @transform_0(%arg0: i32, %arg1: i32) -> (i32, i32) {
    %c0_i32 = arith.constant 0 : i32
    %c0_i32_0 = arith.constant 0 : i32
    %c0_i32_1 = arith.constant 0 : i32
    return %c0_i32, %c0_i32_0 : i32, i32
  }
  func.func @transform_1(%arg0: i32, %arg1: i32) -> (i32, i32, i32, i32) {
    %c0_i32 = arith.constant 0 : i32
    %c0_i32_0 = arith.constant 0 : i32
    %c0_i32_1 = arith.constant 0 : i32
    return %arg0, %arg1, %c0_i32, %c0_i32_0 : i32, i32, i32, i32
  }
  func.func @transform_2(%arg0: i32, %arg1: i32) -> (i32, i32) {
    %c0_i32 = arith.constant 0 : i32
    %c0_i32_0 = arith.constant 0 : i32
    return %c0_i32, %arg0 : i32, i32
  }
  func.func @transform_3(%arg0: i32, %arg1: i32) -> (i32, i32) {
    %c0_i32 = arith.constant 0 : i32
    %c0_i32_0 = arith.constant 0 : i32
    return %c0_i32, %arg0 : i32, i32
  }
}

</mosaic_0001>

<bundles_post_ra>
// kernel: forward.3
= control target key start
LH: loop header
LB: loop body
LE: loop exit
PB: predicated region body
PF: predicated region fallthrough
CT: control target
= control target key end

     0   :  { %s1952_s0 = inlined_call_operand.vmem [shape: bf16[2,1024], index: 0, kind: input, shape index: {}]   ;;  %s1953_s1 = inlined_call_operand.hbm [shape: bf16[2,4,256,512], index: 1, kind: input, shape index: {}]   ;;  %s1954_s2 = inlined_call_operand.hbm [shape: f32[1,1024], index: 2, kind: input, shape index: {}]   ;;  %s1955_s3 = inlined_call_operand.hbm [shape: f32[2,1024], index: 3, kind: output, shape index: {}]  }
   0x1   :  { %1960 = sst [smem:[#allocation16_spill]] %s1953_s1 }
   0x2   :  { %8 = vsyncpa [#allocation3], 0 }
   0x3   :  { %10 = vsyncpa [#allocation3 + $0x1], 0 }
   0x4   :  { %11 = vsyncpa [#allocation6], 0 }
   0x5   :  { %13 = vsyncpa [#allocation6 + $0x1], 0 }
   0x6   :  { %14 = vsyncpa [#allocation4], 0 }
   0x7   :  { %16 = vsyncpa [#allocation4 + $0x1], 0  ;;  %s1581_s12 = smov 0   ;;  %s1583_s13 = smov 0  }
   0x8   :  { %s1585_s14 = smov 0   ;;  %s1587_s15 = smov 0  }
   0x9   :  { %s1589_s16 = smov 0   ;;  %s1591_s17 = smov 0  }
   0xa   :  { %s1593_s18 = smov 0   ;;  %s1595_s19 = smov 0  }
   0xb   :  { %s1597_s20 = smov 0   ;;  %s1599_s21 = smov 0  }
   0xc   :  { %s1601_s22 = smov 0  }
   0xd LB: > { %1961 = sst [smem:[#allocation11_spill]] %s1549_s20  ;;  %s31_s23 = sadd.s32 1, %s1549_s20  ;;  %s1557_s22 = sphi %s1601_s22, %s22_s22   ;;  %s1553_s21 = sphi %s1599_s21, %s1978_s21   ;;  %s1549_s20 = sphi %s1597_s20, %s1977_s20   ;;  %s1545_s19 = sphi %s1595_s19, %s1976_s19   ;;  %s1541_s18 = sphi %s1593_s18, %s1975_s18   ;;  %s1537_s17 = sphi %s1591_s17, %s1984_s17   ;;  %s1533_s16 = sphi %s1589_s16, %s1983_s16   ;;  %s1529_s15 = sphi %s1587_s15, %s1982_s15   ;;  %s1525_s14 = sphi %s1585_s14, %s1981_s14   ;;  %s1521_s13 = sphi %s1583_s13, %s1980_s13   ;;  %s1517_s12 = sphi %s1581_s12, %s1979_s12  }
   0xe   : > { %1962 = sst [smem:[#allocation12_spill]] %s1553_s21  ;;  %s34_s24 = sadd.s32 1, %s1553_s21 }
   0xf   : > { %p32_p0 = scmp.ge.s32.totalorder %s31_s23, 4  ;;  %s64_s25 = sadd.s32 1, %s1537_s17 }
  0x10   : > { %p71_p1 = scmp.ne.s32.totalorder %s1537_s17, %s1533_s16  ;;  %p72_p2 = scmp.eq.s32.totalorder %s1557_s22, 0 }
  0x11   : > { %s1986_s23 = smov (%p32_p0, %s31_s23), 0  ;;  %s1988_s24 = smov (!%p32_p0, %s34_s24), %s1553_s21 }
  0x12   : > { %1963 = sst [smem:[#allocation13_spill]] %s1986_s23  ;;  %s60_s26 = ssub.s32 %s1549_s20, %s1986_s23 }
  0x13   : > { %p1649_p3 = por %p72_p2, %p71_p1  ;;  %p36_p4 = scmp.ge.s32.totalorder %s1988_s24, 2 }
  0x14   : > { %p77_p5 = scmp.ne.s32.totalorder %s1533_s16, %s1529_s15  ;;  %p1277_p6 = scmp.lt.s32.totalorder %s1557_s22, 8 }
  0x15   : > { %s1990_s24 = smov (%p36_p4, %s1988_s24), 0  ;;  %s156_s28 = sand.u32 1, %s1537_s17  }
  0x16   : > { %1965 = sst [smem:[#allocation14_spill]] %s1990_s24  ;;  %s922_s29 = sshll.u32 %s1549_s20, 7 }
  0x17   : > { %s1662_s30 = ssub.s32 %s1553_s21, %s1990_s24  ;;  %s921_s5 = sshll.u32 %s156_s28, 9 }
  0x18   : > { %s61_s4 = sor.u32 %s60_s26, %s1662_s30  ;;  %s923_s6 = sshll.u32 %s1553_s21, 9 }
  0x19   : > { %p62_p7 = scmp.eq.s32.totalorder %s61_s4, 0  ;;  %s160_s7 = scalar_lea.vmem [#allocation2], %s921_s5 }
  0x1a   : > { %s170_s8 = sshll.u32 %s160_s7, 4  ;;  %s165_s10 = sadd.s32 %s923_s6, %s922_s29  ;;  %s171_s8 = int_to_ptr.vmem [resolvable:$true] %s170_s8 }
  0x1b   : > { %s1667_s9 = scalar_select %p62_p7, %s1537_s17, %s64_s25  }
  0x1c   : > { %s924_s11 = sshll.u32 %s165_s10, 2  ;;  %p1267_p8 = pnand %p1277_p6, %p1649_p3 }
  0x1d   : > { %1966 = sst [smem:[#allocation15_spill]] %s1667_s9  ;;  %s157_s25 = scalar_lea.sflag [#allocation3], %s156_s28 }
  0x1e   : > { %s1967_s1 = sld [smem:[#allocation16_spill]]  ;;  %s1559_s29 = smov 256  }
  0x1f   : > { %s1560_s27 = smov 16   ;;  %p927_p9 = scmp.ge.s32.totalorder %s1557_s22, 1 }
  0x20   : > { %p197_p10 = scmp.lt.s32.totalorder %s1557_s22, 9  ;;  %s917_s6 = sadd.s32 4294967295, %s1557_s22  }
  0x21   : > { %s918_s7 = sadd.s32 4294967294, %s1557_s22   ;;  %p78_p12 = scmp.eq.s32.totalorder %s917_s6, 0 }
  0x22   : > { %p1678_p11 = pnand %p927_p9, %p197_p10  ;;  %p88_p13 = scmp.eq.s32.totalorder %s1662_s30, 0 }
  0x23   : > { %s90_s10 = sadd.s32 1, %s1525_s14  ;;  %p1689_p0 = por %p78_p12, %p77_p5 }
  0x24   : > { %s167_s4 = scalar_lea.hbm %s1967_s1, %s924_s11  ;;  %p97_p1 = scmp.ne.s32.totalorder %s1525_s14, %s1521_s13 }
  0x25   : > { %s168_s5 = sshll.u32 %s167_s4, 4  ;;  %p103_p4 = scmp.ne.s32.totalorder %s1521_s13, %s1517_s12  ;;  %s169_s5 = int_to_ptr.hbm [resolvable:$true] %s168_s5 }
  0x26   : > { %1269 = dma.hbm_to_vmem [thread:$0]  (!%p1267_p8), %s169_s5, 8192, %s171_s8, %s157_s25, %s1559_s29, %s1559_s29, %s1560_s27  }
  0x27   : > { %s1696_s8 = scalar_select %p88_p13, %s1525_s14, %s90_s10  }
  0x28   : > { %p1700_p3 = por %p97_p1, %p72_p2  ;;  %p127_p7 = scmp.eq.s32.totalorder %s917_s6, 7 }
  0x29   : > { %p133_p8 = scmp.eq.s32.totalorder %s918_s7, 7  ;;  %p1706_p9 = por %p103_p4, %p78_p12 }
  0x2a   : > { %s180_s15 = sand.u32 1, %s1525_s14   ;;  %p1711_p5 = por %p127_p7, %p97_p1 }
  0x2b   : > { %p1715_p10 = por %p133_p8, %p103_p4  ;;  %s925_s5 = sshll.u32 %s180_s15, 2 }
  0x2c   : > { %s926_s25 = sshll.u32 %s1553_s21, 2  ;;  %s184_s7 = scalar_lea.vmem [#allocation5], %s925_s5 }
  0x2d   : > { %s188_s6 = scalar_lea.hbm %s1954_s2, %s926_s25  ;;  %s192_s10 = sshll.u32 %s184_s7, 4  ;;  %s193_s10 = int_to_ptr.vmem [resolvable:$true] %s192_s10 }
  0x2e   : > { %s190_s1 = sshll.u32 %s188_s6, 4  ;;  %p1270_p2 = pnand %p1277_p6, %p1700_p3  ;;  %s191_s1 = int_to_ptr.hbm [resolvable:$true] %s190_s1 }
  0x2f   : > { %s181_s23 = scalar_lea.sflag [#allocation6], %s180_s15  ;;  %201 = sbr.rel (%p1678_p11) target bundleno = 311 (0x137), region = 32 }
  0x30   : > { %1272 = dma.hbm_to_vmem [thread:$0]  (!%p1270_p2), %s191_s1, 64, %s193_s10, %s181_s23  }
  0x31   : > { %s203_s21 = sand.u32 (!%p1678_p11), 1, %s1533_s16  }
  0x32   : > { %s928_s20 = sshll.u32 (!%p1678_p11), %s203_s21, 9  ;;  %s204_s9 = scalar_lea.sflag (!%p1678_p11), [#allocation3], %s203_s21 }
  0x33   : > { %s1730_s29 = scalar_lea.vmem (!%p1678_p11), [#allocation2], %s928_s20 }
  0x34   : > { %1504 = dma.done.wait (%p1689_p0), %s204_s9, 8192  }
  0x35   : > { %1506 = vsyncadd (%p1689_p0), %s204_s9, 4294959104  ;;  %s1737_s11 = sand.u32 1, %s1521_s13  }
  0x36   : > { %s929_s1 = sshll.u32 %s1737_s11, 2  ;;  %s214_s23 = scalar_lea.sflag [#allocation6], %s1737_s11 }
  0x37   : > { %s217_s24 = scalar_lea.vmem [#allocation5], %s929_s1 }
  0x38   : > { %1508 = dma.done.wait (%p1706_p9), %s214_s23, 64  }
  0x39   : > { %1510 = vsyncadd (%p1706_p9), %s214_s23, 4294967232  ;;  %s930_s20 = sshll.u32 %s1737_s11, 3  ;;  %p931_p6 = scmp.ne.s32.totalorder %s1541_s18, 0 }
  0x3a   : > { %s1746_s21 = scalar_lea.vmem [#allocation7], %s930_s20 }
  0x3b   : > { %251 = sbr.rel (%p931_p6) target bundleno = 72 (0x48), region = 44 }
  0x40   : > { %v252_v0 = vld [vmem:[%s217_s24] sm:$0xf]  ;;  %vm261_vm0 = vcmask 1041408   ;;  %vm263_vm1 = vcmask 1045508   ;;  %vm265_vm2 = vcmask 1043456  }
  0x41   : > { %v254_v1 = vperm.slane %v252_v0, 0  ;;  %v255_v2 = vperm.slane %v252_v0, 1  ;;  %v256_v3 = vperm.slane %v252_v0, 2  ;;  %v257_v4 = vperm.slane %v252_v0, 3 }
  0x43   : > { %v258_v5 = vrot.slane %v255_v2, 6  ;;  %v259_v6 = vrot.slane %v256_v3, 4  ;;  %v260_v7 = vrot.slane %v257_v4, 2 }
  0x45   : > { %v262_v8 = vsel %vm261_vm0, %v254_v1, %v258_v5  ;;  %v264_v9 = vsel %vm263_vm1, %v259_v6, %v260_v7 }
  0x46   : > { %v266_v10 = vsel %vm265_vm2, %v262_v8, %v264_v9 }
  0x47   : > { %268 = vst [vmem:[%s1746_s21] sm:$0xff] %v266_v10 }
  0x48 PF: > { %v1047_v11 = vld [vmem:[%s1730_s29 + $0xe0] sm:$0xf]  ;;  %v1225_v12 = vld [vmem:[%s1730_s29 + $0xec] sm:$0xf0]  ;;  %v1223_v16 = vld [vmem:[%s1730_s29 + $0xe4] sm:$0xf] }
  0x49   : > { %v1175_v13 = vld [vmem:[%s1730_s29 + $0x1e0] sm:$0xf]  ;;  %v1048_v14 = vor.u32 %v1225_v12, %v1047_v11  ;;  %v1257_v15 = vld [vmem:[%s1730_s29 + $0x1ec] sm:$0xf0]  ;;  %v1049_v17 = vld [vmem:[%s1730_s29 + $0xf0] sm:$0xf0] }
  0x4a   : > { %v1176_v18 = vor.u32 %v1257_v15, %v1175_v13  ;;  %v1052_v19 = vor.u32 %v1223_v16, %v1049_v17  ;;  %v1255_v20 = vld [vmem:[%s1730_s29 + $0x1e4] sm:$0xf]  ;;  %v1177_v21 = vld [vmem:[%s1730_s29 + $0x1f0] sm:$0xf0]  ;;  %v1031_v22 = vld [vmem:[%s1730_s29 + $0xc0] sm:$0xf] }
  0x4b   : > { %665 = vmatpush.bf16.msra.mxu0 %v1048_v14  ;;  %v1180_v23 = vor.u32 %v1255_v20, %v1177_v21  ;;  %v1221_v24 = vld [vmem:[%s1730_s29 + $0xcc] sm:$0xf0]  ;;  %v1159_v25 = vld [vmem:[%s1730_s29 + $0x1c0] sm:$0xf]  ;;  %v1219_v29 = vld [vmem:[%s1730_s29 + $0xc4] sm:$0xf] }
  0x4c   : > { %v1253_v26 = vld [vmem:[%s1730_s29 + $0x1cc] sm:$0xf0]  ;;  %678 = vmatpush.bf16.msra.mxu1 %v1176_v18  ;;  %691 = vmatpush.bf16.msra.mxu2 %v1052_v19  ;;  %v1032_v27 = vor.u32 %v1221_v24, %v1031_v22  ;;  %v1033_v30 = vld [vmem:[%s1730_s29 + $0xd0] sm:$0xf0]  ;;  %v1251_v31 = vld [vmem:[%s1730_s29 + $0x1c4] sm:$0xf] }
  0x4d   : > { %v1160_v28 = vor.u32 %v1253_v26, %v1159_v25  ;;  %704 = vmatpush.bf16.msra.mxu3 %v1180_v23  ;;  %v1036_v32 = vor.u32 %v1219_v29, %v1033_v30  ;;  %v1161_v33 = vld [vmem:[%s1730_s29 + $0x1d0] sm:$0xf0]  ;;  %v1015_v34 = vld [vmem:[%s1730_s29 + $0xa0] sm:$0xf]  ;;  %v1217_v35 = vld [vmem:[%s1730_s29 + $0xac] sm:$0xf0] }
  0x4e   : > { %v1164_v36 = vor.u32 %v1251_v31, %v1161_v33  ;;  %v1143_v37 = vld [vmem:[%s1730_s29 + $0x1a0] sm:$0xf]  ;;  %v1249_v38 = vld [vmem:[%s1730_s29 + $0x1ac] sm:$0xf0]  ;;  %v1215_v39 = vld [vmem:[%s1730_s29 + $0xa4] sm:$0xf]  ;;  %v1016_v40 = vor.u32 %v1217_v35, %v1015_v34 }
  0x4f   : > { %666 = vmatpush.bf16.msra.mxu0 %v1032_v27  ;;  %v1017_v41 = vld [vmem:[%s1730_s29 + $0xb0] sm:$0xf0]  ;;  %v1247_v42 = vld [vmem:[%s1730_s29 + $0x1a4] sm:$0xf]  ;;  %v1144_v44 = vor.u32 %v1249_v38, %v1143_v37  ;;  %v999_v46 = vld [vmem:[%s1730_s29 + $0x80] sm:$0xf] }
  0x50   : > { %v1145_v43 = vld [vmem:[%s1730_s29 + $0x1b0] sm:$0xf0]  ;;  %679 = vmatpush.bf16.msra.mxu1 %v1160_v28  ;;  %692 = vmatpush.bf16.msra.mxu2 %v1036_v32  ;;  %v1020_v45 = vor.u32 %v1215_v39, %v1017_v41  ;;  %v1213_v47 = vld [vmem:[%s1730_s29 + $0x8c] sm:$0xf0]  ;;  %v1127_v48 = vld [vmem:[%s1730_s29 + $0x180] sm:$0xf] }
  0x51   : > { %705 = vmatpush.bf16.msra.mxu3 %v1164_v36  ;;  %v1148_v49 = vor.u32 %v1247_v42, %v1145_v43  ;;  %v1245_v50 = vld [vmem:[%s1730_s29 + $0x18c] sm:$0xf0]  ;;  %v1211_v51 = vld [vmem:[%s1730_s29 + $0x84] sm:$0xf]  ;;  %v1001_v52 = vld [vmem:[%s1730_s29 + $0x90] sm:$0xf0]  ;;  %v1000_v55 = vor.u32 %v1213_v47, %v999_v46 }
  0x52   : > { %v1243_v53 = vld [vmem:[%s1730_s29 + $0x184] sm:$0xf]  ;;  %v1129_v54 = vld [vmem:[%s1730_s29 + $0x190] sm:$0xf0]  ;;  %v1128_v56 = vor.u32 %v1245_v50, %v1127_v48  ;;  %v1004_v57 = vor.u32 %v1211_v51, %v1001_v52  ;;  %v983_v58 = vld [vmem:[%s1730_s29 + $0x60] sm:$0xf] }
  0x53   : > { %667 = vmatpush.bf16.msra.mxu0 %v1016_v40  ;;  %v1209_v59 = vld [vmem:[%s1730_s29 + $0x6c] sm:$0xf0]  ;;  %v1111_v60 = vld [vmem:[%s1730_s29 + $0x160] sm:$0xf]  ;;  %v1132_v61 = vor.u32 %v1243_v53, %v1129_v54  ;;  %v1207_v63 = vld [vmem:[%s1730_s29 + $0x64] sm:$0xf] }
  0x54   : > { %680 = vmatpush.bf16.msra.mxu1 %v1144_v44  ;;  %693 = vmatpush.bf16.msra.mxu2 %v1020_v45  ;;  %v1241_v62 = vld [vmem:[%s1730_s29 + $0x16c] sm:$0xf0]  ;;  %v985_v0 = vld [vmem:[%s1730_s29 + $0x70] sm:$0xf0]  ;;  %v1239_v1 = vld [vmem:[%s1730_s29 + $0x164] sm:$0xf]  ;;  %v984_v3 = vor.u32 %v1209_v59, %v983_v58 }
  0x55   : > { %706 = vmatpush.bf16.msra.mxu3 %v1148_v49  ;;  %v1113_v2 = vld [vmem:[%s1730_s29 + $0x170] sm:$0xf0]  ;;  %v1112_v4 = vor.u32 %v1241_v62, %v1111_v60  ;;  %v988_v5 = vor.u32 %v1207_v63, %v985_v0  ;;  %v967_v6 = vld [vmem:[%s1730_s29 + $0x40] sm:$0xf]  ;;  %v1205_v7 = vld [vmem:[%s1730_s29 + $0x4c] sm:$0xf0] }
  0x56   : > { %v1095_v8 = vld [vmem:[%s1730_s29 + $0x140] sm:$0xf]  ;;  %v1116_v9 = vor.u32 %v1239_v1, %v1113_v2  ;;  %v1237_v10 = vld [vmem:[%s1730_s29 + $0x14c] sm:$0xf0]  ;;  %v1203_v11 = vld [vmem:[%s1730_s29 + $0x44] sm:$0xf]  ;;  %v968_v15 = vor.u32 %v1205_v7, %v967_v6 }
  0x57   : > { %668 = vmatpush.bf16.msra.mxu0 %v1000_v55  ;;  %v969_v12 = vld [vmem:[%s1730_s29 + $0x50] sm:$0xf0]  ;;  %v1235_v13 = vld [vmem:[%s1730_s29 + $0x144] sm:$0xf]  ;;  %v1096_v16 = vor.u32 %v1237_v10, %v1095_v8  ;;  %v951_v18 = vld [vmem:[%s1730_s29 + $0x20] sm:$0xf] }
  0x58   : > { %681 = vmatpush.bf16.msra.mxu1 %v1128_v56  ;;  %694 = vmatpush.bf16.msra.mxu2 %v1004_v57  ;;  %v1097_v14 = vld [vmem:[%s1730_s29 + $0x150] sm:$0xf0]  ;;  %v972_v17 = vor.u32 %v1203_v11, %v969_v12  ;;  %v1201_v19 = vld [vmem:[%s1730_s29 + $0x2c] sm:$0xf0]  ;;  %v1079_v20 = vld [vmem:[%s1730_s29 + $0x120] sm:$0xf] }
  0x59   : > { %707 = vmatpush.bf16.msra.mxu3 %v1132_v61  ;;  %v1100_v21 = vor.u32 %v1235_v13, %v1097_v14  ;;  %v1233_v22 = vld [vmem:[%s1730_s29 + $0x12c] sm:$0xf0]  ;;  %v1199_v23 = vld [vmem:[%s1730_s29 + $0x24] sm:$0xf]  ;;  %v953_v24 = vld [vmem:[%s1730_s29 + $0x30] sm:$0xf0]  ;;  %v952_v28 = vor.u32 %v1201_v19, %v951_v18 }
  0x5a   : > { %v1231_v25 = vld [vmem:[%s1730_s29 + $0x124] sm:$0xf]  ;;  %v1081_v26 = vld [vmem:[%s1730_s29 + $0x130] sm:$0xf0]  ;;  %v935_v27 = vld [vmem:[%s1730_s29] sm:$0xf]  ;;  %v1080_v32 = vor.u32 %v1233_v22, %v1079_v20  ;;  %v956_v33 = vor.u32 %v1199_v23, %v953_v24 }
  0x5b   : > { %669 = vmatpush.bf16.msra.mxu0 %v984_v3  ;;  %v1197_v29 = vld [vmem:[%s1730_s29 + $0xc] sm:$0xf0]  ;;  %v1063_v30 = vld [vmem:[%s1730_s29 + $0x100] sm:$0xf]  ;;  %v1195_v34 = vld [vmem:[%s1730_s29 + $0x4] sm:$0xf]  ;;  %v1084_v37 = vor.u32 %v1231_v25, %v1081_v26 }
  0x5c   : > { %682 = vmatpush.bf16.msra.mxu1 %v1112_v4  ;;  %695 = vmatpush.bf16.msra.mxu2 %v988_v5  ;;  %v1229_v31 = vld [vmem:[%s1730_s29 + $0x10c] sm:$0xf0]  ;;  %v937_v35 = vld [vmem:[%s1730_s29 + $0x10] sm:$0xf0]  ;;  %v1227_v36 = vld [vmem:[%s1730_s29 + $0x104] sm:$0xf]  ;;  %v936_v43 = vor.u32 %v1197_v29, %v935_v27 }
  0x5d   : > { %708 = vmatpush.bf16.msra.mxu3 %v1116_v9  ;;  %v1065_v38 = vld [vmem:[%s1730_s29 + $0x110] sm:$0xf0]  ;;  %v1055_v39 = vld [vmem:[%s1730_s29 + $0xe8] sm:$0xf]  ;;  %v1226_v40 = vld [vmem:[%s1730_s29 + $0xf4] sm:$0xf0]  ;;  %v1064_v46 = vor.u32 %v1229_v31, %v1063_v30  ;;  %v940_v47 = vor.u32 %v1195_v34, %v937_v35 }
  0x5e   : > { %v1183_v41 = vld [vmem:[%s1730_s29 + $0x1e8] sm:$0xf]  ;;  %v1258_v42 = vld [vmem:[%s1730_s29 + $0x1f4] sm:$0xf0]  ;;  %s932_s9 = sshll.u32 %s1541_s18, 8  ;;  %v1068_v50 = vor.u32 %v1227_v36, %v1065_v38  ;;  %v1056_v51 = vor.u32 %v1226_v40, %v1055_v39  ;;  %vm776_vm3 = vcmask 1041408  }
  0x5f   : > { %670 = vmatpush.bf16.msra.mxu0 %v968_v15  ;;  %v1224_v44 = vld [vmem:[%s1730_s29 + $0xec] sm:$0xf]  ;;  %v1057_v45 = vld [vmem:[%s1730_s29 + $0xf8] sm:$0xf0]  ;;  %s270_s28 = sshra.s32 %s932_s9, 7  ;;  %v1184_v54 = vor.u32 %v1258_v42, %v1183_v41  ;;  %vm778_vm4 = vcmask 1045508  }
  0x60   : > { %683 = vmatpush.bf16.msra.mxu1 %v1096_v16  ;;  %696 = vmatpush.bf16.msra.mxu2 %v972_v17  ;;  %v1256_v48 = vld [vmem:[%s1730_s29 + $0x1ec] sm:$0xf]  ;;  %v1185_v49 = vld [vmem:[%s1730_s29 + $0x1f8] sm:$0xf0]  ;;  %s272_s5 = scalar_lea.vmem %s1952_s0, %s270_s28  ;;  %v1039_v52 = vld [vmem:[%s1730_s29 + $0xc8] sm:$0xf]  ;;  %v1060_v55 = vor.u32 %v1224_v44, %v1057_v45 }
  0x61   : > { %709 = vmatpush.bf16.msra.mxu3 %v1100_v21  ;;  %v273_v53 = vld [vmem:[%s272_s5] sm:$0x3]  ;;  %v1167_v57 = vld [vmem:[%s1730_s29 + $0x1c8] sm:$0xf]  ;;  %v1188_v58 = vor.u32 %v1256_v48, %v1185_v49  ;;  %v1220_v60 = vld [vmem:[%s1730_s29 + $0xcc] sm:$0xf] }
  0x62   : > { %v1222_v56 = vld [vmem:[%s1730_s29 + $0xd4] sm:$0xf0]  ;;  %340 = vst [vmem:[#allocation1] ss:$9 sm:$0xff] %v273_v53  ;;  %v1041_v61 = vld [vmem:[%s1730_s29 + $0xd8] sm:$0xf0] }
  0x63   : > { %671 = vmatpush.bf16.msra.mxu0 %v952_v28  ;;  %v1254_v59 = vld [vmem:[%s1730_s29 + $0x1d4] sm:$0xf0]  ;;  %v1252_v62 = vld [vmem:[%s1730_s29 + $0x1cc] sm:$0xf]  ;;  %v1169_v63 = vld [vmem:[%s1730_s29 + $0x1d8] sm:$0xf0]  ;;  %v1040_v0 = vor.u32 %v1222_v56, %v1039_v52  ;;  %v1044_v2 = vor.u32 %v1220_v60, %v1041_v61 }
  0x64   : > { %684 = vmatpush.bf16.msra.mxu1 %v1080_v32  ;;  %697 = vmatpush.bf16.msra.mxu2 %v956_v33  ;;  %v1168_v1 = vor.u32 %v1254_v59, %v1167_v57  ;;  %v1023_v3 = vld [vmem:[%s1730_s29 + $0xa8] sm:$0xf]  ;;  %v1218_v4 = vld [vmem:[%s1730_s29 + $0xb4] sm:$0xf0]  ;;  %v1172_v6 = vor.u32 %v1252_v62, %v1169_v63  ;;  %v1216_v8 = vld [vmem:[%s1730_s29 + $0xac] sm:$0xf] }
  0x65   : > { %710 = vmatpush.bf16.msra.mxu3 %v1084_v37  ;;  %v1151_v5 = vld [vmem:[%s1730_s29 + $0x1a8] sm:$0xf]  ;;  %v1250_v7 = vld [vmem:[%s1730_s29 + $0x1b4] sm:$0xf0]  ;;  %v1025_v9 = vld [vmem:[%s1730_s29 + $0xb8] sm:$0xf0]  ;;  %v1024_v14 = vor.u32 %v1218_v4, %v1023_v3 }
  0x66   : > { %v1248_v10 = vld [vmem:[%s1730_s29 + $0x1ac] sm:$0xf]  ;;  %v1153_v11 = vld [vmem:[%s1730_s29 + $0x1b8] sm:$0xf0]  ;;  %v1152_v15 = vor.u32 %v1250_v7, %v1151_v5  ;;  %v1028_v16 = vor.u32 %v1216_v8, %v1025_v9  ;;  %v1007_v17 = vld [vmem:[%s1730_s29 + $0x88] sm:$0xf] }
  0x67   : > { %672 = vmatpush.bf16.msra.mxu0 %v936_v43  ;;  %v1214_v18 = vld [vmem:[%s1730_s29 + $0x94] sm:$0xf0]  ;;  %v1135_v19 = vld [vmem:[%s1730_s29 + $0x188] sm:$0xf]  ;;  %v1156_v20 = vor.u32 %v1248_v10, %v1153_v11  ;;  %v1212_v22 = vld [vmem:[%s1730_s29 + $0x8c] sm:$0xf] }
  0x68   : > { %685 = vmatpush.bf16.msra.mxu1 %v1064_v46  ;;  %698 = vmatpush.bf16.msra.mxu2 %v940_v47  ;;  %v1246_v21 = vld [vmem:[%s1730_s29 + $0x194] sm:$0xf0]  ;;  %v1009_v23 = vld [vmem:[%s1730_s29 + $0x98] sm:$0xf0]  ;;  %v1244_v24 = vld [vmem:[%s1730_s29 + $0x18c] sm:$0xf]  ;;  %v1008_v26 = vor.u32 %v1214_v18, %v1007_v17 }
  0x69   : > { %711 = vmatpush.bf16.msra.mxu3 %v1068_v50  ;;  %v1842_v12 = vld [vmem:[#allocation1] sm:$0xff]  ;;  %v1844_v13 = vld [vmem:[#allocation1 + $0x9] sm:$0xff]  ;;  %v1136_v27 = vor.u32 %v1246_v21, %v1135_v19  ;;  %v1012_v28 = vor.u32 %v1212_v22, %v1009_v23  ;;  %v1208_v34 = vld [vmem:[%s1730_s29 + $0x6c] sm:$0xf]  ;;  %vm780_vm5 = vcmask 1043456   ;;  %p1189_p11 = scmp.ne.s32.totalorder %s1541_s18, 3 }
  0x6a   : > { %v1137_v25 = vld [vmem:[%s1730_s29 + $0x198] sm:$0xf0]  ;;  %673 = vmatmul.bf16.vlgmr.msra.gmra.mxu0 %v1842_v12  ;;  %v991_v29 = vld [vmem:[%s1730_s29 + $0x68] sm:$0xf]  ;;  %v1210_v30 = vld [vmem:[%s1730_s29 + $0x74] sm:$0xf0] }
  0x6b   : > { %717 = vmatpush.bf16.msrb.mxu0 %v1056_v51  ;;  %699 = vmatmul.bf16.vlgmr.msra.gmra.mxu2 %v1842_v12  ;;  %v1119_v31 = vld [vmem:[%s1730_s29 + $0x168] sm:$0xf]  ;;  %v1140_v32 = vor.u32 %v1244_v24, %v1137_v25  ;;  %v1242_v33 = vld [vmem:[%s1730_s29 + $0x174] sm:$0xf0]  ;;  %v993_v35 = vld [vmem:[%s1730_s29 + $0x78] sm:$0xf0]  ;;  %v992_v38 = vor.u32 %v1210_v30, %v991_v29 }
  0x6c   : > { %730 = vmatpush.bf16.msrb.mxu1 %v1184_v54  ;;  %743 = vmatpush.bf16.msrb.mxu2 %v1060_v55  ;;  %v1240_v36 = vld [vmem:[%s1730_s29 + $0x16c] sm:$0xf]  ;;  %v1121_v37 = vld [vmem:[%s1730_s29 + $0x178] sm:$0xf0]  ;;  %v1120_v39 = vor.u32 %v1242_v33, %v1119_v31  ;;  %v996_v40 = vor.u32 %v1208_v34, %v993_v35  ;;  %v975_v41 = vld [vmem:[%s1730_s29 + $0x48] sm:$0xf] }
  0x6d   : > { %756 = vmatpush.bf16.msrb.mxu3 %v1188_v58  ;;  %686 = vmatmul.bf16.vlgmr.msra.gmra.mxu1 %v1844_v13  ;;  %v1206_v42 = vld [vmem:[%s1730_s29 + $0x54] sm:$0xf0]  ;;  %v1103_v43 = vld [vmem:[%s1730_s29 + $0x148] sm:$0xf]  ;;  %v1124_v44 = vor.u32 %v1240_v36, %v1121_v37  ;;  %v1204_v46 = vld [vmem:[%s1730_s29 + $0x4c] sm:$0xf] }
  0x6e   : > { %712 = vmatmul.bf16.vlgmr.msra.gmra.mxu3 %v1844_v13  ;;  %v1238_v45 = vld [vmem:[%s1730_s29 + $0x154] sm:$0xf0]  ;;  %v977_v47 = vld [vmem:[%s1730_s29 + $0x58] sm:$0xf0]  ;;  %v1236_v48 = vld [vmem:[%s1730_s29 + $0x14c] sm:$0xf]  ;;  %v976_v50 = vor.u32 %v1206_v42, %v975_v41 }
  0x6f   : > { %718 = vmatpush.bf16.msrb.mxu0 %v1040_v0  ;;  %v1105_v49 = vld [vmem:[%s1730_s29 + $0x158] sm:$0xf0]  ;;  %v1104_v51 = vor.u32 %v1238_v45, %v1103_v43  ;;  %v980_v52 = vor.u32 %v1204_v46, %v977_v47  ;;  %v959_v53 = vld [vmem:[%s1730_s29 + $0x28] sm:$0xf]  ;;  %v1202_v54 = vld [vmem:[%s1730_s29 + $0x34] sm:$0xf0] }
  0x70   : > { %731 = vmatpush.bf16.msrb.mxu1 %v1168_v1  ;;  %744 = vmatpush.bf16.msrb.mxu2 %v1044_v2  ;;  %v1087_v55 = vld [vmem:[%s1730_s29 + $0x128] sm:$0xf]  ;;  %v1108_v56 = vor.u32 %v1236_v48, %v1105_v49  ;;  %v1234_v57 = vld [vmem:[%s1730_s29 + $0x134] sm:$0xf0]  ;;  %v1200_v58 = vld [vmem:[%s1730_s29 + $0x2c] sm:$0xf]  ;;  %v960_v62 = vor.u32 %v1202_v54, %v959_v53 }
  0x71   : > { %757 = vmatpush.bf16.msrb.mxu3 %v1172_v6  ;;  %v961_v59 = vld [vmem:[%s1730_s29 + $0x38] sm:$0xf0]  ;;  %v1232_v60 = vld [vmem:[%s1730_s29 + $0x12c] sm:$0xf]  ;;  %v1088_v63 = vor.u32 %v1234_v57, %v1087_v55  ;;  %v943_v1 = vld [vmem:[%s1730_s29 + $0x8] sm:$0xf] }
  0x72   : > { %v1089_v61 = vld [vmem:[%s1730_s29 + $0x138] sm:$0xf0]  ;;  %v964_v0 = vor.u32 %v1200_v58, %v961_v59  ;;  %v1198_v2 = vld [vmem:[%s1730_s29 + $0x14] sm:$0xf0]  ;;  %v1071_v3 = vld [vmem:[%s1730_s29 + $0x108] sm:$0xf] }
  0x73   : > { %719 = vmatpush.bf16.msrb.mxu0 %v1024_v14  ;;  %v1092_v4 = vor.u32 %v1232_v60, %v1089_v61  ;;  %v1230_v5 = vld [vmem:[%s1730_s29 + $0x114] sm:$0xf0]  ;;  %v1196_v6 = vld [vmem:[%s1730_s29 + $0xc] sm:$0xf]  ;;  %v945_v7 = vld [vmem:[%s1730_s29 + $0x18] sm:$0xf0]  ;;  %v944_v10 = vor.u32 %v1198_v2, %v943_v1 }
  0x74   : > { %732 = vmatpush.bf16.msrb.mxu1 %v1152_v15  ;;  %745 = vmatpush.bf16.msrb.mxu2 %v1028_v16  ;;  %v1228_v8 = vld [vmem:[%s1730_s29 + $0x10c] sm:$0xf]  ;;  %v1073_v9 = vld [vmem:[%s1730_s29 + $0x118] sm:$0xf0]  ;;  %v1072_v11 = vor.u32 %v1230_v5, %v1071_v3  ;;  %v948_v14 = vor.u32 %v1196_v6, %v945_v7 }
  0x75   : > { %758 = vmatpush.bf16.msrb.mxu3 %v1156_v20  ;;  %v1076_v15 = vor.u32 %v1228_v8, %v1073_v9  ;;  %v274_v35 = vld [vmem:[%s1746_s21] sm:$0xff] }
  0x77   : > { %720 = vmatpush.bf16.msrb.mxu0 %v1008_v26 }
  0x78   : > { %733 = vmatpush.bf16.msrb.mxu1 %v1136_v27  ;;  %746 = vmatpush.bf16.msrb.mxu2 %v1012_v28 }
  0x79   : > { %759 = vmatpush.bf16.msrb.mxu3 %v1140_v32 }
  0x7b   : > { %721 = vmatpush.bf16.msrb.mxu0 %v992_v38 }
  0x7c   : > { %734 = vmatpush.bf16.msrb.mxu1 %v1120_v39  ;;  %747 = vmatpush.bf16.msrb.mxu2 %v996_v40 }
  0x7d   : > { %760 = vmatpush.bf16.msrb.mxu3 %v1124_v44 }
  0x7f   : > { %722 = vmatpush.bf16.msrb.mxu0 %v976_v50 }
  0x80   : > { %735 = vmatpush.bf16.msrb.mxu1 %v1104_v51  ;;  %748 = vmatpush.bf16.msrb.mxu2 %v980_v52 }
  0x81   : > { %761 = vmatpush.bf16.msrb.mxu3 %v1108_v56 }
  0x83   : > { %723 = vmatpush.bf16.msrb.mxu0 %v960_v62 }
  0x84   : > { %736 = vmatpush.bf16.msrb.mxu1 %v1088_v63  ;;  %749 = vmatpush.bf16.msrb.mxu2 %v964_v0 }
  0x85   : > { %762 = vmatpush.bf16.msrb.mxu3 %v1092_v4 }
  0x87   : > { %724 = vmatpush.bf16.msrb.mxu0 %v944_v10 }
  0x88   : > { %737 = vmatpush.bf16.msrb.mxu1 %v1072_v11  ;;  %750 = vmatpush.bf16.msrb.mxu2 %v948_v14 }
  0x89   : > { %763 = vmatpush.bf16.msrb.mxu3 %v1076_v15 }
  0x8a   : > { %725 = vmatmul.bf16.vlgmr.msrb.gmra.mxu0 %v1842_v12 }
  0x8b   : > { %738 = vmatmul.bf16.vlgmr.msrb.gmra.mxu1 %v1844_v13  ;;  %751 = vmatmul.bf16.vlgmr.msrb.gmra.mxu2 %v1842_v12 }
  0x8c   : > { %764 = vmatmul.bf16.vlgmr.msrb.gmra.mxu3 %v1844_v13 }
  0xe7   : > { %v674_v16 = vpop.f32.mrf.mxu0 }
  0xea   : > { %v687_v17 = vpop.f32.mrf.mxu1 }
  0xeb   : > { %v688_v31 = vadd.f32 %v687_v17, %v674_v16 }
  0xee   : > { %v700_v18 = vpop.f32.mrf.mxu2 }
  0xef   : > { %v676_v20 = vpop.f32.mrf.mxu0 }
  0xf1   : > { %v713_v19 = vpop.f32.mrf.mxu3 }
  0xf2   : > { %v689_v21 = vpop.f32.mrf.mxu1  ;;  %v714_v26 = vadd.f32 %v713_v19, %v700_v18 }
  0xf4   : > { %v773_v12 = vrot.slane %v714_v26, 6 }
  0xf6   : > { %v702_v22 = vpop.f32.mrf.mxu2  ;;  %v777_v36 = vsel %vm776_vm3, %v688_v31, %v773_v12 }
  0xf9   : > { %v715_v23 = vpop.f32.mrf.mxu3 }
 0x107   : > { %v726_v24 = vpop.f32.mrf.mxu0 }
 0x108   : > { %v739_v25 = vpop.f32.mrf.mxu1 }
 0x109   : > { %v740_v27 = vadd.f32 %v739_v25, %v726_v24 }
 0x10b   : > { %v774_v13 = vrot.slane %v740_v27, 4 }
 0x10e   : > { %v752_v28 = vpop.f32.mrf.mxu2 }
 0x10f   : > { %v765_v29 = vpop.f32.mrf.mxu3  ;;  %v728_v30 = vpop.f32.mrf.mxu0 }
 0x110   : > { %v766_v32 = vadd.f32 %v765_v29, %v752_v28  ;;  %v741_v33 = vpop.f32.mrf.mxu1 }
 0x112   : > { %v775_v34 = vrot.slane %v766_v32, 2 }
 0x114   : > { %v779_v37 = vsel %vm778_vm4, %v774_v13, %v775_v34  ;;  %788 = sbr.rel (%p1189_p11) target bundleno = 296 (0x128), region = 48 }
 0x115   : > { %v781_v38 = vsel %vm780_vm5, %v777_v36, %v779_v37 }
 0x116   : > { %v783_v39 = vadd.f32 %v781_v38, %v274_v35  ;;  %v754_v40 = vpop.f32.mrf.mxu2 }
 0x117   : > { %v767_v41 = vpop.f32.mrf.mxu3 }
 0x118   : > { %784 = vst [vmem:[%s1746_s21] sm:$0xff] %v783_v39 }
 0x11f   : > { %v789_v42 = vld [vmem:[%s1746_s21] sm:$0xff] }
 0x120   : > { %1369 = vtanh.f32 %v789_v42 }
 0x126   : > { %v1370_v43 = vpop.eup %1369 }
 0x127   : > { %791 = vst [vmem:[%s1746_s21] sm:$0xff] %v1370_v43 }
 0x128 PF: > { %s1259_s25 = sshll.u32 %s1545_s19, 3  ;;  %s806_s10 = sshll.u32 %s1746_s21, 4  ;;  %s807_s10 = int_to_ptr.vmem [resolvable:$true] %s806_s10 }
 0x129   : > { %s804_s7 = scalar_lea.hbm %s1955_s3, %s1259_s25  ;;  %s793_s29 = scalar_lea.sflag [#allocation4], %s1737_s11 }
 0x12a   : > { %s808_s18 = sshll.u32 %s804_s7, 4  ;;  %s1451_s19 = scalar_lea.hbm %s1955_s3, 16  ;;  %s809_s18 = int_to_ptr.hbm [resolvable:$true] %s808_s18 }
 0x12b   : > { %s1445_s1 = sshra.s32 %s809_s18, 4  ;;  %s1446_s1 = int_to_ptr.hbm [resolvable:$true] %s1445_s1 }
 0x12c   : > { %s1447_s23 = scalar_lea.hbm %s1446_s1, 8  ;;  %p1452_p1 = scmp.lt.s32.totalorder %s1446_s1, %s1955_s3 }
 0x12d   : > { %p1448_p12 = scmp.ne.s32.totalorder %s1446_s1, %s1447_s23  ;;  %p1453_p3 = scmp.lt.s32.totalorder %s1451_s19, %s1447_s23 }
 0x12f   : > { %p1449_p13 = pnand %p1448_p12, %p1711_p5  ;;  %p1454_p4 = por %p1453_p3, %p1452_p1 }
 0x131   : > { %p1450_p0 = pneg %p1449_p13 }
 0x133   : > { %p1455_p7 = pnand %p1454_p4, %p1450_p0 }
 0x135   : > { %1458 = shalt.err (!%p1455_p7)
}
 0x136   : > { %1264 = dma.vmem_to_hbm [thread:$0]  (%p1711_p5), %s807_s10, 128, %s809_s18, %s793_s29  }
 0x137 PF: > { %p1278_p8 = scmp.ge.s32.totalorder %s1557_s22, 2  ;;  %s820_s11 = sand.u32 1, %s1517_s12  }
 0x138   : > { %s821_s21 = scalar_lea.sflag [#allocation4], %s820_s11 }
 0x139   : > { %p1274_p9 = pnand %p1278_p8, %p1715_p10 }
 0x13b   : > { %p1275_p2 = pneg %p1274_p9 }
 0x13d   : > { %1512 = dma.done.wait (%p1275_p2), %s821_s21, 128  }
 0x13e   : > { %1514 = vsyncadd (%p1275_p2), %s821_s21, 4294967168  ;;  %s22_s22 = sadd.s32 1, %s1557_s22   ;;  %s1974_s26 = sld [smem:[#allocation15_spill]] }
 0x13f   : > { %p19_p6 = scmp.ge.s32.totalorder %s22_s22, 10   ;;  %s1975_s18 = sld [smem:[#allocation11_spill]] }
 0x140   : > { %s1976_s19 = sld [smem:[#allocation12_spill]]  ;;  %s1979_s12 = smov %s1521_s13 }
 0x141   : > { %s1977_s20 = sld [smem:[#allocation13_spill]]  ;;  %s1980_s13 = smov %s1525_s14 }
 0x142   : > { %s1978_s21 = sld [smem:[#allocation14_spill]]  ;;  %s1981_s14 = smov %s1696_s8 }
 0x143   : > { %s1982_s15 = smov %s1533_s16  ;;  %s1983_s16 = smov %s1537_s17 }
 0x144   : > { %s1984_s17 = smov %s1974_s26  ;;  %21 = sbr.rel (!%p19_p6) target bundleno = 13 (0xd), region = 99 }
 0x149   :  { %827 = vsyncpa [#allocation3], 1 }
 0x14a   :  { %829 = vsyncpa [#allocation3 + $0x1], 1 }
 0x14b   :  { %830 = vsyncpa [#allocation6], 1 }
 0x14c   :  { %832 = vsyncpa [#allocation6 + $0x1], 1 }
 0x14d   :  { %833 = vsyncpa [#allocation4], 1 }
 0x14e   :  { %835 = vsyncpa [#allocation4 + $0x1], 1 }

// kernel: forward.2
= control target key start
LH: loop header
LB: loop body
LE: loop exit
PB: predicated region body
PF: predicated region fallthrough
CT: control target
= control target key end

     0   :  { %s1875_s0 = inlined_call_operand.vmem [shape: bf16[2,1024], index: 0, kind: input, shape index: {}]   ;;  %s1876_s1 = inlined_call_operand.hbm [shape: bf16[2,4,256,512], index: 1, kind: input, shape index: {}]   ;;  %s1877_s2 = inlined_call_operand.hbm [shape: f32[1,1024], index: 2, kind: input, shape index: {}]   ;;  %s1878_s3 = inlined_call_operand.vmem [shape: bf16[2,1024], index: 3, kind: output, shape index: {}]  }
   0x1   :  { %1881 = sst [smem:[#allocation11_spill]] %s1876_s1 }
   0x2   :  { %8 = vsyncpa [#allocation4], 0 }
   0x3   :  { %10 = vsyncpa [#allocation4 + $0x1], 0 }
   0x4   :  { %11 = vsyncpa [#allocation6], 0 }
   0x5   :  { %13 = vsyncpa [#allocation6 + $0x1], 0  ;;  %s1537_s12 = smov 0   ;;  %s1539_s13 = smov 0  }
   0x6   :  { %s1541_s14 = smov 0   ;;  %s1543_s15 = smov 0  }
   0x7   :  { %s1545_s16 = smov 0   ;;  %s1547_s17 = smov 0  }
   0x8   :  { %s1549_s18 = smov 0   ;;  %s1551_s19 = smov 0  }
   0x9   :  { %s1553_s20 = smov 0   ;;  %s1555_s21 = smov 0  }
   0xa   :  { %s1557_s22 = smov 0  }
   0xb LB: > { %s28_s23 = sadd.s32 1, %s1505_s20  ;;  %s31_s24 = sadd.s32 1, %s1509_s21  ;;  %s1513_s22 = sphi %s1557_s22, %s19_s22   ;;  %s1509_s21 = sphi %s1555_s21, %s1900_s21   ;;  %s1505_s20 = sphi %s1553_s20, %s1899_s20   ;;  %s1501_s19 = sphi %s1551_s19, %s1898_s19   ;;  %s1497_s18 = sphi %s1549_s18, %s1897_s18   ;;  %s1493_s17 = sphi %s1547_s17, %s1896_s17   ;;  %s1489_s16 = sphi %s1545_s16, %s1895_s16   ;;  %s1485_s15 = sphi %s1543_s15, %s1894_s15   ;;  %s1481_s14 = sphi %s1541_s14, %s1893_s14   ;;  %s1477_s13 = sphi %s1539_s13, %s1892_s13   ;;  %s1473_s12 = sphi %s1537_s12, %s1891_s12  }
   0xc   : > { %p29_p0 = scmp.ge.s32.totalorder %s28_s23, 4  ;;  %s61_s25 = sadd.s32 1, %s1493_s17 }
   0xd   : > { %p68_p1 = scmp.ne.s32.totalorder %s1493_s17, %s1489_s16  ;;  %p69_p2 = scmp.eq.s32.totalorder %s1513_s22, 0 }
   0xe   : > { %s1902_s23 = smov (%p29_p0, %s28_s23), 0  ;;  %s1904_s24 = smov (!%p29_p0, %s31_s24), %s1509_s21 }
   0xf   : > { %1882 = sst [smem:[#allocation9_spill]] %s1902_s23  ;;  %s57_s26 = ssub.s32 %s1505_s20, %s1902_s23 }
  0x10   : > { %p1605_p3 = por %p69_p2, %p68_p1  ;;  %p33_p4 = scmp.ge.s32.totalorder %s1904_s24, 2 }
  0x11   : > { %p74_p5 = scmp.ne.s32.totalorder %s1489_s16, %s1485_s15  ;;  %p1268_p6 = scmp.lt.s32.totalorder %s1513_s22, 8 }
  0x12   : > { %s1906_s24 = smov (%p33_p4, %s1904_s24), 0  ;;  %s153_s28 = sand.u32 1, %s1493_s17  }
  0x13   : > { %1884 = sst [smem:[#allocation10_spill]] %s1906_s24  ;;  %s923_s29 = sshll.u32 %s1505_s20, 7 }
  0x14   : > { %s1618_s30 = ssub.s32 %s1509_s21, %s1906_s24  ;;  %s922_s5 = sshll.u32 %s153_s28, 9 }
  0x15   : > { %s58_s4 = sor.u32 %s57_s26, %s1618_s30  ;;  %s924_s6 = sshll.u32 %s1509_s21, 9 }
  0x16   : > { %p59_p7 = scmp.eq.s32.totalorder %s58_s4, 0  ;;  %s157_s7 = scalar_lea.vmem [#allocation3], %s922_s5 }
  0x17   : > { %s167_s8 = sshll.u32 %s157_s7, 4  ;;  %s162_s10 = sadd.s32 %s924_s6, %s923_s29  ;;  %s168_s8 = int_to_ptr.vmem [resolvable:$true] %s167_s8 }
  0x18   : > { %s1623_s9 = scalar_select %p59_p7, %s1493_s17, %s61_s25  }
  0x19   : > { %s925_s11 = sshll.u32 %s162_s10, 2  ;;  %p1262_p8 = pnand %p1268_p6, %p1605_p3 }
  0x1a   : > { %s1885_s1 = sld [smem:[#allocation11_spill]]  ;;  %s154_s29 = scalar_lea.sflag [#allocation4], %s153_s28 }
  0x1b   : > { %s1515_s6 = smov 256   ;;  %s1516_s27 = smov 16  }
  0x1c   : > { %p928_p9 = scmp.ge.s32.totalorder %s1513_s22, 1  ;;  %p194_p10 = scmp.lt.s32.totalorder %s1513_s22, 9 }
  0x1d   : > { %s918_s10 = sadd.s32 4294967295, %s1513_s22   ;;  %p85_p13 = scmp.eq.s32.totalorder %s1618_s30, 0 }
  0x1e   : > { %p1634_p11 = pnand %p928_p9, %p194_p10  ;;  %p75_p12 = scmp.eq.s32.totalorder %s918_s10, 0 }
  0x1f   : > { %p94_p0 = scmp.ne.s32.totalorder %s1481_s14, %s1477_s13  ;;  %p100_p3 = scmp.ne.s32.totalorder %s1477_s13, %s1473_s12 }
  0x20   : > { %s164_s5 = scalar_lea.hbm %s1885_s1, %s925_s11  ;;  %s87_s11 = sadd.s32 1, %s1481_s14 }
  0x21   : > { %s165_s25 = sshll.u32 %s164_s5, 4  ;;  %p1646_p1 = por %p75_p12, %p74_p5  ;;  %s166_s25 = int_to_ptr.hbm [resolvable:$true] %s165_s25 }
  0x22   : > { %1264 = dma.hbm_to_vmem [thread:$0]  (!%p1262_p8), %s166_s25, 8192, %s168_s8, %s154_s29, %s1515_s6, %s1515_s6, %s1516_s27  }
  0x23   : > { %s1653_s26 = scalar_select %p85_p13, %s1481_s14, %s87_s11  }
  0x24   : > { %p1655_p4 = por %p100_p3, %p75_p12  ;;  %s177_s4 = sand.u32 1, %s1481_s14  }
  0x25   : > { %s927_s5 = sshll.u32 %s1509_s21, 2  ;;  %p96_p7 = por %p94_p0, %p69_p2 }
  0x26   : > { %s926_s30 = sshll.u32 %s177_s4, 2  ;;  %s185_s15 = scalar_lea.hbm %s1877_s2, %s927_s5 }
  0x27   : > { %s187_s6 = sshll.u32 %s185_s15, 4  ;;  %s181_s27 = scalar_lea.vmem [#allocation5], %s926_s30  ;;  %s188_s6 = int_to_ptr.hbm [resolvable:$true] %s187_s6 }
  0x28   : > { %s189_s10 = sshll.u32 %s181_s27, 4  ;;  %p1265_p5 = pnand %p1268_p6, %p96_p7  ;;  %s190_s10 = int_to_ptr.vmem [resolvable:$true] %s189_s10 }
  0x29   : > { %s178_s12 = scalar_lea.sflag [#allocation6], %s177_s4  ;;  %198 = sbr.rel (%p1634_p11) target bundleno = 298 (0x12a), region = 32 }
  0x2a   : > { %1267 = dma.hbm_to_vmem [thread:$0]  (!%p1265_p5), %s188_s6, 64, %s190_s10, %s178_s12  }
  0x2b   : > { %s200_s11 = sand.u32 (!%p1634_p11), 1, %s1489_s16  }
  0x2c   : > { %s929_s1 = sshll.u32 (!%p1634_p11), %s200_s11, 9  ;;  %s201_s24 = scalar_lea.sflag (!%p1634_p11), [#allocation4], %s200_s11 }
  0x2d   : > { %s1671_s23 = scalar_lea.vmem (!%p1634_p11), [#allocation3], %s929_s1 }
  0x2e   : > { %1464 = dma.done.wait (%p1646_p1), %s201_s24, 8192  }
  0x2f   : > { %1466 = vsyncadd (%p1646_p1), %s201_s24, 4294959104  ;;  %s210_s5 = sand.u32 1, %s1477_s13  }
  0x30   : > { %s930_s4 = sshll.u32 %s210_s5, 2  ;;  %s211_s30 = scalar_lea.sflag [#allocation6], %s210_s5 }
  0x31   : > { %s214_s25 = scalar_lea.vmem [#allocation5], %s930_s4 }
  0x32   : > { %1468 = dma.done.wait (%p1655_p4), %s211_s30, 64  }
  0x33   : > { %1470 = vsyncadd (%p1655_p4), %s211_s30, 4294967232  ;;  %s931_s7 = sshll.u32 %s1501_s19, 2  ;;  %p932_p6 = scmp.ne.s32.totalorder %s1497_s18, 0 }
  0x34   : > { %p244_p2 = scmp.lt.s32.totalorder %s931_s7, 7 }
  0x35   : > { %251 = sbr.rel (%p932_p6) target bundleno = 66 (0x42), region = 44 }
  0x36   : > { %s1908_s7 = smov (!%p244_p2, %s931_s7), 7 }
  0x37   : > { %s246_s24 = scalar_lea.vmem %s1878_s3, %s1908_s7 }
  0x3a   : > { %v252_v0 = vld [vmem:[%s214_s25] sm:$0xf]  ;;  %vm261_vm0 = vcmask 1041408   ;;  %vm263_vm1 = vcmask 1045508   ;;  %vm265_vm2 = vcmask 1043456  }
  0x3b   : > { %v254_v1 = vperm.slane %v252_v0, 0  ;;  %v255_v2 = vperm.slane %v252_v0, 1  ;;  %v256_v3 = vperm.slane %v252_v0, 2  ;;  %v257_v4 = vperm.slane %v252_v0, 3 }
  0x3d   : > { %v258_v5 = vrot.slane %v255_v2, 6  ;;  %v259_v6 = vrot.slane %v256_v3, 4  ;;  %v260_v7 = vrot.slane %v257_v4, 2 }
  0x3f   : > { %v262_v8 = vsel %vm261_vm0, %v254_v1, %v258_v5  ;;  %v264_v9 = vsel %vm263_vm1, %v259_v6, %v260_v7 }
  0x40   : > { %v266_v10 = vsel %vm265_vm2, %v262_v8, %v264_v9 }
  0x41   : > { %268 = vst [vmem:[#allocation2] sm:$0xff] %v266_v10 }
  0x42 PF: > { %v1048_v11 = vld [vmem:[%s1671_s23 + $0xe0] sm:$0xf]  ;;  %v1223_v12 = vld [vmem:[%s1671_s23 + $0xec] sm:$0xf0]  ;;  %v1221_v16 = vld [vmem:[%s1671_s23 + $0xe4] sm:$0xf] }
  0x43   : > { %v1176_v13 = vld [vmem:[%s1671_s23 + $0x1e0] sm:$0xf]  ;;  %v1049_v14 = vor.u32 %v1223_v12, %v1048_v11  ;;  %v1255_v15 = vld [vmem:[%s1671_s23 + $0x1ec] sm:$0xf0]  ;;  %v1050_v17 = vld [vmem:[%s1671_s23 + $0xf0] sm:$0xf0] }
  0x44   : > { %v1177_v18 = vor.u32 %v1255_v15, %v1176_v13  ;;  %v1053_v19 = vor.u32 %v1221_v16, %v1050_v17  ;;  %v1253_v20 = vld [vmem:[%s1671_s23 + $0x1e4] sm:$0xf]  ;;  %v1178_v21 = vld [vmem:[%s1671_s23 + $0x1f0] sm:$0xf0]  ;;  %v1032_v22 = vld [vmem:[%s1671_s23 + $0xc0] sm:$0xf] }
  0x45   : > { %665 = vmatpush.bf16.msra.mxu0 %v1049_v14  ;;  %v1181_v23 = vor.u32 %v1253_v20, %v1178_v21  ;;  %v1219_v24 = vld [vmem:[%s1671_s23 + $0xcc] sm:$0xf0]  ;;  %v1160_v25 = vld [vmem:[%s1671_s23 + $0x1c0] sm:$0xf]  ;;  %v1217_v29 = vld [vmem:[%s1671_s23 + $0xc4] sm:$0xf] }
  0x46   : > { %v1251_v26 = vld [vmem:[%s1671_s23 + $0x1cc] sm:$0xf0]  ;;  %678 = vmatpush.bf16.msra.mxu1 %v1177_v18  ;;  %691 = vmatpush.bf16.msra.mxu2 %v1053_v19  ;;  %v1033_v27 = vor.u32 %v1219_v24, %v1032_v22  ;;  %v1034_v30 = vld [vmem:[%s1671_s23 + $0xd0] sm:$0xf0]  ;;  %v1249_v31 = vld [vmem:[%s1671_s23 + $0x1c4] sm:$0xf] }
  0x47   : > { %v1161_v28 = vor.u32 %v1251_v26, %v1160_v25  ;;  %704 = vmatpush.bf16.msra.mxu3 %v1181_v23  ;;  %v1037_v32 = vor.u32 %v1217_v29, %v1034_v30  ;;  %v1162_v33 = vld [vmem:[%s1671_s23 + $0x1d0] sm:$0xf0]  ;;  %v1016_v34 = vld [vmem:[%s1671_s23 + $0xa0] sm:$0xf]  ;;  %v1215_v35 = vld [vmem:[%s1671_s23 + $0xac] sm:$0xf0] }
  0x48   : > { %v1165_v36 = vor.u32 %v1249_v31, %v1162_v33  ;;  %v1144_v37 = vld [vmem:[%s1671_s23 + $0x1a0] sm:$0xf]  ;;  %v1247_v38 = vld [vmem:[%s1671_s23 + $0x1ac] sm:$0xf0]  ;;  %v1213_v39 = vld [vmem:[%s1671_s23 + $0xa4] sm:$0xf]  ;;  %v1017_v40 = vor.u32 %v1215_v35, %v1016_v34 }
  0x49   : > { %666 = vmatpush.bf16.msra.mxu0 %v1033_v27  ;;  %v1018_v41 = vld [vmem:[%s1671_s23 + $0xb0] sm:$0xf0]  ;;  %v1245_v42 = vld [vmem:[%s1671_s23 + $0x1a4] sm:$0xf]  ;;  %v1145_v44 = vor.u32 %v1247_v38, %v1144_v37  ;;  %v1000_v46 = vld [vmem:[%s1671_s23 + $0x80] sm:$0xf] }
  0x4a   : > { %v1146_v43 = vld [vmem:[%s1671_s23 + $0x1b0] sm:$0xf0]  ;;  %679 = vmatpush.bf16.msra.mxu1 %v1161_v28  ;;  %692 = vmatpush.bf16.msra.mxu2 %v1037_v32  ;;  %v1021_v45 = vor.u32 %v1213_v39, %v1018_v41  ;;  %v1211_v47 = vld [vmem:[%s1671_s23 + $0x8c] sm:$0xf0]  ;;  %v1128_v48 = vld [vmem:[%s1671_s23 + $0x180] sm:$0xf] }
  0x4b   : > { %705 = vmatpush.bf16.msra.mxu3 %v1165_v36  ;;  %v1149_v49 = vor.u32 %v1245_v42, %v1146_v43  ;;  %v1243_v50 = vld [vmem:[%s1671_s23 + $0x18c] sm:$0xf0]  ;;  %v1209_v51 = vld [vmem:[%s1671_s23 + $0x84] sm:$0xf]  ;;  %v1002_v52 = vld [vmem:[%s1671_s23 + $0x90] sm:$0xf0]  ;;  %v1001_v55 = vor.u32 %v1211_v47, %v1000_v46 }
  0x4c   : > { %v1241_v53 = vld [vmem:[%s1671_s23 + $0x184] sm:$0xf]  ;;  %v1130_v54 = vld [vmem:[%s1671_s23 + $0x190] sm:$0xf0]  ;;  %v1129_v56 = vor.u32 %v1243_v50, %v1128_v48  ;;  %v1005_v57 = vor.u32 %v1209_v51, %v1002_v52  ;;  %v984_v58 = vld [vmem:[%s1671_s23 + $0x60] sm:$0xf] }
  0x4d   : > { %667 = vmatpush.bf16.msra.mxu0 %v1017_v40  ;;  %v1207_v59 = vld [vmem:[%s1671_s23 + $0x6c] sm:$0xf0]  ;;  %v1112_v60 = vld [vmem:[%s1671_s23 + $0x160] sm:$0xf]  ;;  %v1133_v61 = vor.u32 %v1241_v53, %v1130_v54  ;;  %v1205_v63 = vld [vmem:[%s1671_s23 + $0x64] sm:$0xf] }
  0x4e   : > { %680 = vmatpush.bf16.msra.mxu1 %v1145_v44  ;;  %693 = vmatpush.bf16.msra.mxu2 %v1021_v45  ;;  %v1239_v62 = vld [vmem:[%s1671_s23 + $0x16c] sm:$0xf0]  ;;  %v986_v0 = vld [vmem:[%s1671_s23 + $0x70] sm:$0xf0]  ;;  %v1237_v1 = vld [vmem:[%s1671_s23 + $0x164] sm:$0xf]  ;;  %v985_v3 = vor.u32 %v1207_v59, %v984_v58 }
  0x4f   : > { %706 = vmatpush.bf16.msra.mxu3 %v1149_v49  ;;  %v1114_v2 = vld [vmem:[%s1671_s23 + $0x170] sm:$0xf0]  ;;  %v1113_v4 = vor.u32 %v1239_v62, %v1112_v60  ;;  %v989_v5 = vor.u32 %v1205_v63, %v986_v0  ;;  %v968_v6 = vld [vmem:[%s1671_s23 + $0x40] sm:$0xf]  ;;  %v1203_v7 = vld [vmem:[%s1671_s23 + $0x4c] sm:$0xf0] }
  0x50   : > { %v1096_v8 = vld [vmem:[%s1671_s23 + $0x140] sm:$0xf]  ;;  %v1117_v9 = vor.u32 %v1237_v1, %v1114_v2  ;;  %v1235_v10 = vld [vmem:[%s1671_s23 + $0x14c] sm:$0xf0]  ;;  %v1201_v11 = vld [vmem:[%s1671_s23 + $0x44] sm:$0xf]  ;;  %v969_v15 = vor.u32 %v1203_v7, %v968_v6 }
  0x51   : > { %668 = vmatpush.bf16.msra.mxu0 %v1001_v55  ;;  %v970_v12 = vld [vmem:[%s1671_s23 + $0x50] sm:$0xf0]  ;;  %v1233_v13 = vld [vmem:[%s1671_s23 + $0x144] sm:$0xf]  ;;  %v1097_v16 = vor.u32 %v1235_v10, %v1096_v8  ;;  %v952_v18 = vld [vmem:[%s1671_s23 + $0x20] sm:$0xf] }
  0x52   : > { %681 = vmatpush.bf16.msra.mxu1 %v1129_v56  ;;  %694 = vmatpush.bf16.msra.mxu2 %v1005_v57  ;;  %v1098_v14 = vld [vmem:[%s1671_s23 + $0x150] sm:$0xf0]  ;;  %v973_v17 = vor.u32 %v1201_v11, %v970_v12  ;;  %v1199_v19 = vld [vmem:[%s1671_s23 + $0x2c] sm:$0xf0]  ;;  %v1080_v20 = vld [vmem:[%s1671_s23 + $0x120] sm:$0xf] }
  0x53   : > { %707 = vmatpush.bf16.msra.mxu3 %v1133_v61  ;;  %v1101_v21 = vor.u32 %v1233_v13, %v1098_v14  ;;  %v1231_v22 = vld [vmem:[%s1671_s23 + $0x12c] sm:$0xf0]  ;;  %v1197_v23 = vld [vmem:[%s1671_s23 + $0x24] sm:$0xf]  ;;  %v954_v24 = vld [vmem:[%s1671_s23 + $0x30] sm:$0xf0]  ;;  %v953_v28 = vor.u32 %v1199_v19, %v952_v18 }
  0x54   : > { %v1229_v25 = vld [vmem:[%s1671_s23 + $0x124] sm:$0xf]  ;;  %v1082_v26 = vld [vmem:[%s1671_s23 + $0x130] sm:$0xf0]  ;;  %v936_v27 = vld [vmem:[%s1671_s23] sm:$0xf]  ;;  %v1081_v32 = vor.u32 %v1231_v22, %v1080_v20  ;;  %v957_v33 = vor.u32 %v1197_v23, %v954_v24 }
  0x55   : > { %669 = vmatpush.bf16.msra.mxu0 %v985_v3  ;;  %v1195_v29 = vld [vmem:[%s1671_s23 + $0xc] sm:$0xf0]  ;;  %v1064_v30 = vld [vmem:[%s1671_s23 + $0x100] sm:$0xf]  ;;  %v1193_v34 = vld [vmem:[%s1671_s23 + $0x4] sm:$0xf]  ;;  %v1085_v37 = vor.u32 %v1229_v25, %v1082_v26 }
  0x56   : > { %682 = vmatpush.bf16.msra.mxu1 %v1113_v4  ;;  %695 = vmatpush.bf16.msra.mxu2 %v989_v5  ;;  %v1227_v31 = vld [vmem:[%s1671_s23 + $0x10c] sm:$0xf0]  ;;  %v938_v35 = vld [vmem:[%s1671_s23 + $0x10] sm:$0xf0]  ;;  %v1225_v36 = vld [vmem:[%s1671_s23 + $0x104] sm:$0xf]  ;;  %v937_v43 = vor.u32 %v1195_v29, %v936_v27 }
  0x57   : > { %708 = vmatpush.bf16.msra.mxu3 %v1117_v9  ;;  %v1066_v38 = vld [vmem:[%s1671_s23 + $0x110] sm:$0xf0]  ;;  %v1056_v39 = vld [vmem:[%s1671_s23 + $0xe8] sm:$0xf]  ;;  %v1224_v40 = vld [vmem:[%s1671_s23 + $0xf4] sm:$0xf0]  ;;  %v1065_v46 = vor.u32 %v1227_v31, %v1064_v30  ;;  %v941_v47 = vor.u32 %v1193_v34, %v938_v35 }
  0x58   : > { %v1184_v41 = vld [vmem:[%s1671_s23 + $0x1e8] sm:$0xf]  ;;  %v1256_v42 = vld [vmem:[%s1671_s23 + $0x1f4] sm:$0xf0]  ;;  %s933_s19 = sshll.u32 %s1497_s18, 8  ;;  %v1069_v50 = vor.u32 %v1225_v36, %v1066_v38  ;;  %v1057_v51 = vor.u32 %v1224_v40, %v1056_v39  ;;  %vm776_vm3 = vcmask 1041408  }
  0x59   : > { %670 = vmatpush.bf16.msra.mxu0 %v969_v15  ;;  %v1222_v44 = vld [vmem:[%s1671_s23 + $0xec] sm:$0xf]  ;;  %v1058_v45 = vld [vmem:[%s1671_s23 + $0xf8] sm:$0xf0]  ;;  %s270_s8 = sshra.s32 %s933_s19, 7  ;;  %v1185_v54 = vor.u32 %v1256_v42, %v1184_v41  ;;  %vm778_vm4 = vcmask 1045508  }
  0x5a   : > { %683 = vmatpush.bf16.msra.mxu1 %v1097_v16  ;;  %696 = vmatpush.bf16.msra.mxu2 %v973_v17  ;;  %v1254_v48 = vld [vmem:[%s1671_s23 + $0x1ec] sm:$0xf]  ;;  %v1186_v49 = vld [vmem:[%s1671_s23 + $0x1f8] sm:$0xf0]  ;;  %s272_s6 = scalar_lea.vmem %s1875_s0, %s270_s8  ;;  %v1040_v52 = vld [vmem:[%s1671_s23 + $0xc8] sm:$0xf]  ;;  %v1061_v55 = vor.u32 %v1222_v44, %v1058_v45 }
  0x5b   : > { %709 = vmatpush.bf16.msra.mxu3 %v1101_v21  ;;  %v273_v53 = vld [vmem:[%s272_s6] sm:$0x3]  ;;  %v1220_v56 = vld [vmem:[%s1671_s23 + $0xd4] sm:$0xf0]  ;;  %v1168_v57 = vld [vmem:[%s1671_s23 + $0x1c8] sm:$0xf]  ;;  %v1189_v58 = vor.u32 %v1254_v48, %v1186_v49 }
  0x5c   : > { %340 = vst [vmem:[#allocation1] ss:$9 sm:$0xff] %v273_v53  ;;  %v1252_v59 = vld [vmem:[%s1671_s23 + $0x1d4] sm:$0xf0]  ;;  %v1218_v60 = vld [vmem:[%s1671_s23 + $0xcc] sm:$0xf]  ;;  %v1041_v0 = vor.u32 %v1220_v56, %v1040_v52 }
  0x5d   : > { %671 = vmatpush.bf16.msra.mxu0 %v953_v28  ;;  %v1042_v61 = vld [vmem:[%s1671_s23 + $0xd8] sm:$0xf0]  ;;  %v1250_v62 = vld [vmem:[%s1671_s23 + $0x1cc] sm:$0xf]  ;;  %v1169_v1 = vor.u32 %v1252_v59, %v1168_v57  ;;  %v1024_v3 = vld [vmem:[%s1671_s23 + $0xa8] sm:$0xf] }
  0x5e   : > { %684 = vmatpush.bf16.msra.mxu1 %v1081_v32  ;;  %697 = vmatpush.bf16.msra.mxu2 %v957_v33  ;;  %v1170_v63 = vld [vmem:[%s1671_s23 + $0x1d8] sm:$0xf0]  ;;  %v1045_v2 = vor.u32 %v1218_v60, %v1042_v61  ;;  %v1216_v4 = vld [vmem:[%s1671_s23 + $0xb4] sm:$0xf0]  ;;  %v1152_v5 = vld [vmem:[%s1671_s23 + $0x1a8] sm:$0xf] }
  0x5f   : > { %710 = vmatpush.bf16.msra.mxu3 %v1085_v37  ;;  %v1173_v6 = vor.u32 %v1250_v62, %v1170_v63  ;;  %v1248_v7 = vld [vmem:[%s1671_s23 + $0x1b4] sm:$0xf0]  ;;  %v1214_v8 = vld [vmem:[%s1671_s23 + $0xac] sm:$0xf]  ;;  %v1026_v9 = vld [vmem:[%s1671_s23 + $0xb8] sm:$0xf0]  ;;  %v1025_v14 = vor.u32 %v1216_v4, %v1024_v3 }
  0x60   : > { %v1246_v10 = vld [vmem:[%s1671_s23 + $0x1ac] sm:$0xf]  ;;  %v1154_v11 = vld [vmem:[%s1671_s23 + $0x1b8] sm:$0xf0]  ;;  %v1153_v15 = vor.u32 %v1248_v7, %v1152_v5  ;;  %v1029_v16 = vor.u32 %v1214_v8, %v1026_v9  ;;  %v1008_v17 = vld [vmem:[%s1671_s23 + $0x88] sm:$0xf] }
  0x61   : > { %672 = vmatpush.bf16.msra.mxu0 %v937_v43  ;;  %v1212_v18 = vld [vmem:[%s1671_s23 + $0x94] sm:$0xf0]  ;;  %v1136_v19 = vld [vmem:[%s1671_s23 + $0x188] sm:$0xf]  ;;  %v1157_v20 = vor.u32 %v1246_v10, %v1154_v11  ;;  %v1210_v22 = vld [vmem:[%s1671_s23 + $0x8c] sm:$0xf] }
  0x62   : > { %685 = vmatpush.bf16.msra.mxu1 %v1065_v46  ;;  %698 = vmatpush.bf16.msra.mxu2 %v941_v47  ;;  %v1244_v21 = vld [vmem:[%s1671_s23 + $0x194] sm:$0xf0]  ;;  %v1010_v23 = vld [vmem:[%s1671_s23 + $0x98] sm:$0xf0]  ;;  %v1242_v24 = vld [vmem:[%s1671_s23 + $0x18c] sm:$0xf]  ;;  %v1009_v26 = vor.u32 %v1212_v18, %v1008_v17 }
  0x63   : > { %711 = vmatpush.bf16.msra.mxu3 %v1069_v50  ;;  %v1782_v12 = vld [vmem:[#allocation1] sm:$0xff]  ;;  %v1784_v13 = vld [vmem:[#allocation1 + $0x9] sm:$0xff]  ;;  %v1137_v27 = vor.u32 %v1244_v21, %v1136_v19  ;;  %v1013_v28 = vor.u32 %v1210_v22, %v1010_v23  ;;  %v992_v29 = vld [vmem:[%s1671_s23 + $0x68] sm:$0xf]  ;;  %vm780_vm5 = vcmask 1043456   ;;  %p1190_p8 = scmp.ne.s32.totalorder %s1497_s18, 3 }
  0x64   : > { %v1138_v25 = vld [vmem:[%s1671_s23 + $0x198] sm:$0xf0]  ;;  %673 = vmatmul.bf16.vlgmr.msra.gmra.mxu0 %v1782_v12  ;;  %v1208_v30 = vld [vmem:[%s1671_s23 + $0x74] sm:$0xf0]  ;;  %v1120_v31 = vld [vmem:[%s1671_s23 + $0x168] sm:$0xf] }
  0x65   : > { %717 = vmatpush.bf16.msrb.mxu0 %v1057_v51  ;;  %699 = vmatmul.bf16.vlgmr.msra.gmra.mxu2 %v1782_v12  ;;  %v1141_v32 = vor.u32 %v1242_v24, %v1138_v25  ;;  %v1240_v33 = vld [vmem:[%s1671_s23 + $0x174] sm:$0xf0]  ;;  %v1206_v34 = vld [vmem:[%s1671_s23 + $0x6c] sm:$0xf]  ;;  %v994_v35 = vld [vmem:[%s1671_s23 + $0x78] sm:$0xf0]  ;;  %v993_v38 = vor.u32 %v1208_v30, %v992_v29 }
  0x66   : > { %730 = vmatpush.bf16.msrb.mxu1 %v1185_v54  ;;  %743 = vmatpush.bf16.msrb.mxu2 %v1061_v55  ;;  %v1238_v36 = vld [vmem:[%s1671_s23 + $0x16c] sm:$0xf]  ;;  %v1122_v37 = vld [vmem:[%s1671_s23 + $0x178] sm:$0xf0]  ;;  %v1121_v39 = vor.u32 %v1240_v33, %v1120_v31  ;;  %v997_v40 = vor.u32 %v1206_v34, %v994_v35  ;;  %v976_v41 = vld [vmem:[%s1671_s23 + $0x48] sm:$0xf] }
  0x67   : > { %756 = vmatpush.bf16.msrb.mxu3 %v1189_v58  ;;  %686 = vmatmul.bf16.vlgmr.msra.gmra.mxu1 %v1784_v13  ;;  %v1204_v42 = vld [vmem:[%s1671_s23 + $0x54] sm:$0xf0]  ;;  %v1104_v43 = vld [vmem:[%s1671_s23 + $0x148] sm:$0xf]  ;;  %v1125_v44 = vor.u32 %v1238_v36, %v1122_v37  ;;  %v1202_v46 = vld [vmem:[%s1671_s23 + $0x4c] sm:$0xf] }
  0x68   : > { %712 = vmatmul.bf16.vlgmr.msra.gmra.mxu3 %v1784_v13  ;;  %v1236_v45 = vld [vmem:[%s1671_s23 + $0x154] sm:$0xf0]  ;;  %v978_v47 = vld [vmem:[%s1671_s23 + $0x58] sm:$0xf0]  ;;  %v1234_v48 = vld [vmem:[%s1671_s23 + $0x14c] sm:$0xf]  ;;  %v977_v50 = vor.u32 %v1204_v42, %v976_v41 }
  0x69   : > { %718 = vmatpush.bf16.msrb.mxu0 %v1041_v0  ;;  %v1106_v49 = vld [vmem:[%s1671_s23 + $0x158] sm:$0xf0]  ;;  %v1105_v51 = vor.u32 %v1236_v45, %v1104_v43  ;;  %v981_v52 = vor.u32 %v1202_v46, %v978_v47  ;;  %v960_v53 = vld [vmem:[%s1671_s23 + $0x28] sm:$0xf]  ;;  %v1200_v54 = vld [vmem:[%s1671_s23 + $0x34] sm:$0xf0] }
  0x6a   : > { %731 = vmatpush.bf16.msrb.mxu1 %v1169_v1  ;;  %744 = vmatpush.bf16.msrb.mxu2 %v1045_v2  ;;  %v1088_v55 = vld [vmem:[%s1671_s23 + $0x128] sm:$0xf]  ;;  %v1109_v56 = vor.u32 %v1234_v48, %v1106_v49  ;;  %v1232_v57 = vld [vmem:[%s1671_s23 + $0x134] sm:$0xf0]  ;;  %v1198_v58 = vld [vmem:[%s1671_s23 + $0x2c] sm:$0xf]  ;;  %v961_v62 = vor.u32 %v1200_v54, %v960_v53 }
  0x6b   : > { %757 = vmatpush.bf16.msrb.mxu3 %v1173_v6  ;;  %v962_v59 = vld [vmem:[%s1671_s23 + $0x38] sm:$0xf0]  ;;  %v1230_v60 = vld [vmem:[%s1671_s23 + $0x12c] sm:$0xf]  ;;  %v1089_v63 = vor.u32 %v1232_v57, %v1088_v55  ;;  %v944_v1 = vld [vmem:[%s1671_s23 + $0x8] sm:$0xf] }
  0x6c   : > { %v1090_v61 = vld [vmem:[%s1671_s23 + $0x138] sm:$0xf0]  ;;  %v965_v0 = vor.u32 %v1198_v58, %v962_v59  ;;  %v1196_v2 = vld [vmem:[%s1671_s23 + $0x14] sm:$0xf0]  ;;  %v1072_v3 = vld [vmem:[%s1671_s23 + $0x108] sm:$0xf] }
  0x6d   : > { %719 = vmatpush.bf16.msrb.mxu0 %v1025_v14  ;;  %v1093_v4 = vor.u32 %v1230_v60, %v1090_v61  ;;  %v1228_v5 = vld [vmem:[%s1671_s23 + $0x114] sm:$0xf0]  ;;  %v1194_v6 = vld [vmem:[%s1671_s23 + $0xc] sm:$0xf]  ;;  %v946_v7 = vld [vmem:[%s1671_s23 + $0x18] sm:$0xf0]  ;;  %v945_v10 = vor.u32 %v1196_v2, %v944_v1 }
  0x6e   : > { %732 = vmatpush.bf16.msrb.mxu1 %v1153_v15  ;;  %745 = vmatpush.bf16.msrb.mxu2 %v1029_v16  ;;  %v1226_v8 = vld [vmem:[%s1671_s23 + $0x10c] sm:$0xf]  ;;  %v1074_v9 = vld [vmem:[%s1671_s23 + $0x118] sm:$0xf0]  ;;  %v1073_v11 = vor.u32 %v1228_v5, %v1072_v3  ;;  %v949_v14 = vor.u32 %v1194_v6, %v946_v7 }
  0x6f   : > { %758 = vmatpush.bf16.msrb.mxu3 %v1157_v20  ;;  %v1077_v15 = vor.u32 %v1226_v8, %v1074_v9  ;;  %v274_v35 = vld [vmem:[#allocation2] sm:$0xff] }
  0x71   : > { %720 = vmatpush.bf16.msrb.mxu0 %v1009_v26 }
  0x72   : > { %733 = vmatpush.bf16.msrb.mxu1 %v1137_v27  ;;  %746 = vmatpush.bf16.msrb.mxu2 %v1013_v28 }
  0x73   : > { %759 = vmatpush.bf16.msrb.mxu3 %v1141_v32 }
  0x75   : > { %721 = vmatpush.bf16.msrb.mxu0 %v993_v38 }
  0x76   : > { %734 = vmatpush.bf16.msrb.mxu1 %v1121_v39  ;;  %747 = vmatpush.bf16.msrb.mxu2 %v997_v40 }
  0x77   : > { %760 = vmatpush.bf16.msrb.mxu3 %v1125_v44 }
  0x79   : > { %722 = vmatpush.bf16.msrb.mxu0 %v977_v50 }
  0x7a   : > { %735 = vmatpush.bf16.msrb.mxu1 %v1105_v51  ;;  %748 = vmatpush.bf16.msrb.mxu2 %v981_v52 }
  0x7b   : > { %761 = vmatpush.bf16.msrb.mxu3 %v1109_v56 }
  0x7d   : > { %723 = vmatpush.bf16.msrb.mxu0 %v961_v62 }
  0x7e   : > { %736 = vmatpush.bf16.msrb.mxu1 %v1089_v63  ;;  %749 = vmatpush.bf16.msrb.mxu2 %v965_v0 }
  0x7f   : > { %762 = vmatpush.bf16.msrb.mxu3 %v1093_v4 }
  0x81   : > { %724 = vmatpush.bf16.msrb.mxu0 %v945_v10 }
  0x82   : > { %737 = vmatpush.bf16.msrb.mxu1 %v1073_v11  ;;  %750 = vmatpush.bf16.msrb.mxu2 %v949_v14 }
  0x83   : > { %763 = vmatpush.bf16.msrb.mxu3 %v1077_v15 }
  0x84   : > { %725 = vmatmul.bf16.vlgmr.msrb.gmra.mxu0 %v1782_v12 }
  0x85   : > { %738 = vmatmul.bf16.vlgmr.msrb.gmra.mxu1 %v1784_v13  ;;  %751 = vmatmul.bf16.vlgmr.msrb.gmra.mxu2 %v1782_v12 }
  0x86   : > { %764 = vmatmul.bf16.vlgmr.msrb.gmra.mxu3 %v1784_v13 }
  0xe1   : > { %v674_v16 = vpop.f32.mrf.mxu0 }
  0xe4   : > { %v687_v17 = vpop.f32.mrf.mxu1 }
  0xe5   : > { %v688_v31 = vadd.f32 %v687_v17, %v674_v16 }
  0xe8   : > { %v700_v18 = vpop.f32.mrf.mxu2 }
  0xe9   : > { %v676_v20 = vpop.f32.mrf.mxu0 }
  0xeb   : > { %v713_v19 = vpop.f32.mrf.mxu3 }
  0xec   : > { %v689_v21 = vpop.f32.mrf.mxu1  ;;  %v714_v26 = vadd.f32 %v713_v19, %v700_v18 }
  0xee   : > { %v773_v32 = vrot.slane %v714_v26, 6 }
  0xf0   : > { %v702_v22 = vpop.f32.mrf.mxu2  ;;  %v777_v36 = vsel %vm776_vm3, %v688_v31, %v773_v32 }
  0xf3   : > { %v715_v23 = vpop.f32.mrf.mxu3 }
 0x101   : > { %v726_v24 = vpop.f32.mrf.mxu0 }
 0x102   : > { %v739_v25 = vpop.f32.mrf.mxu1 }
 0x103   : > { %v740_v27 = vadd.f32 %v739_v25, %v726_v24 }
 0x105   : > { %v774_v12 = vrot.slane %v740_v27, 4 }
 0x108   : > { %v752_v28 = vpop.f32.mrf.mxu2 }
 0x109   : > { %v765_v29 = vpop.f32.mrf.mxu3  ;;  %v728_v30 = vpop.f32.mrf.mxu0 }
 0x10a   : > { %v766_v33 = vadd.f32 %v765_v29, %v752_v28  ;;  %v741_v13 = vpop.f32.mrf.mxu1 }
 0x10c   : > { %v775_v34 = vrot.slane %v766_v33, 2 }
 0x10e   : > { %v779_v37 = vsel %vm778_vm4, %v774_v12, %v775_v34  ;;  %788 = sbr.rel (%p1190_p8) target bundleno = 298 (0x12a), region = 48 }
 0x10f   : > { %v781_v38 = vsel %vm780_vm5, %v777_v36, %v779_v37 }
 0x110   : > { %v783_v39 = vadd.f32 %v781_v38, %v274_v35  ;;  %v754_v40 = vpop.f32.mrf.mxu2 }
 0x111   : > { %v767_v41 = vpop.f32.mrf.mxu3 }
 0x112   : > { %784 = vst [vmem:[#allocation2] sm:$0xff] %v783_v39 }
 0x113   : > { %vm807_vm6 = vcmask 1040384   ;;  %vm811_vm7 = vcmask 1042434  }
 0x119   : > { %v789_v42 = vld [vmem:[#allocation2] sm:$0xff] }
 0x11a   : > { %791 = vst [vmem:[#allocation1] ss:$4 sm:$0xff] %v789_v42 }
 0x121   : > { %v792_v43 = vld.sshfl [vmem:[#allocation1] sm:$0xff pattern:$0x73625140]  ;;  %v793_v44 = vld.sshfl [vmem:[#allocation1 + $0x8] sm:$0xff pattern:$0x73625140] }
 0x122   : > { %v794_v45 = vld.sshfl [vmem:[#allocation1 + $0x10] sm:$0xff pattern:$0x73625140]  ;;  %v795_v46 = vld.sshfl [vmem:[#allocation1 + $0x18] sm:$0xff pattern:$0x73625140]  ;;  %v800_v47 = vpack.c.bf16 %v793_v44, %v792_v43 }
 0x123   : > { %v801_v48 = vpack.c.bf16 %v795_v46, %v794_v45 }
 0x124   : > { %v804_v49 = vrot.slane %v800_v47, 3 }
 0x125   : > { %v805_v50 = vrot.slane %v801_v48, 6  ;;  %v806_v51 = vrot.slane %v801_v48, 1 }
 0x126   : > { %v810_v52 = vsel %vm807_vm6, %v800_v47, %v804_v49 }
 0x127   : > { %v814_v53 = vsel %vm811_vm7, %v805_v50, %v806_v51 }
 0x128   : > { %v815_v54 = vsel %vm776_vm3, %v810_v52, %v814_v53 }
 0x129   : > { %817 = vst [vmem:[%s246_s24] sm:$0xf] %v815_v54 }
 0x12a PF: > { %s19_s22 = sadd.s32 1, %s1513_s22   ;;  %s1889_s27 = sld [smem:[#allocation9_spill]] }
 0x12b   : > { %p16_p9 = scmp.ge.s32.totalorder %s19_s22, 10   ;;  %s1890_s10 = sld [smem:[#allocation10_spill]] }
 0x12c   : > { %s1891_s12 = smov %s1477_s13  ;;  %s1892_s13 = smov %s1481_s14 }
 0x12d   : > { %s1893_s14 = smov %s1653_s26  ;;  %s1894_s15 = smov %s1489_s16 }
 0x12e   : > { %s1895_s16 = smov %s1493_s17  ;;  %s1896_s17 = smov %s1623_s9 }
 0x12f   : > { %s1897_s18 = smov %s1505_s20  ;;  %s1898_s19 = smov %s1509_s21 }
 0x130   : > { %s1899_s20 = smov %s1889_s27  ;;  %18 = sbr.rel (!%p16_p9) target bundleno = 11 (0xb), region = 94 }
 0x131   : > { %s1900_s21 = smov %s1890_s10 }
 0x135   :  { %838 = vsyncpa [#allocation4], 1 }
 0x136   :  { %840 = vsyncpa [#allocation4 + $0x1], 1 }
 0x137   :  { %841 = vsyncpa [#allocation6], 1 }
 0x138   :  { %843 = vsyncpa [#allocation6 + $0x1], 1 }

</bundles_post_ra>
